<compile_context>
chip_gen: v5e
topology: v5e:2x2
jax: 0.10.0
libtpu: 0.0.40
codegen_flags: <defaults>
</compile_context>

<pallas_src>
import functools

import jax
import jax.numpy as jnp
from jax.experimental import pallas as pl
from jax.experimental.pallas import tpu as pltpu


def _round_up(x, m):
    return ((x + m - 1) // m) * m


def _choose_tm(M, block_m):
    """Row-tile size: multiple of 16 (bf16 sublane tile), big tiles to amortize
    per-grid-step overhead, and an even number of grid steps when tiled so the
    'parallel' axis splits evenly across v7x's 2 TensorCores."""
    Mr = _round_up(max(M, 16), 16)
    if Mr <= block_m:
        return Mr
    n = pl.cdiv(M, block_m)
    if n > 1 and n % 2:
        n += 1
    return _round_up(pl.cdiv(M, n), 16)


# ----------------------------------------------------------------------------
# Pallas kernel: out = maybe_relu(A @ W + bias)
#   A, W are bf16 (MXU-native), accumulation + epilogue in f32 (v5e has no
#   bf16 VPU path); cast to the output dtype only at the store so conv layers
#   can emit bf16 activations.
# ----------------------------------------------------------------------------
def _fused_matmul_kernel(a_ref, w_ref, b_ref, o_ref, *, apply_relu):
    acc = jnp.dot(a_ref[...], w_ref[...], preferred_element_type=jnp.float32)
    y = acc + b_ref[...]
    if apply_relu:
        y = jnp.maximum(y, 0.0)
    o_ref[...] = y.astype(o_ref.dtype)


def fused_matmul(a, w_p, bias_p, n_out, *, apply_relu, out_dtype, block_m=512):
    """maybe_relu(a @ w + bias) with pre-prepared (padded, bf16) weights.

    w_p:    (Kp, Np) bf16, Kp and Np multiples of 128 (zero-padded rows/cols).
    bias_p: (1, Np) f32 (zero-padded).
    a is zero-padded on rows (to the row tile) and columns (to Kp); the pads
    multiply zero weight rows/columns so they contribute nothing.
    Returns (M, n_out) in out_dtype.
    """
    M, K = a.shape
    Kp, Np = w_p.shape
    assert Kp >= K and Kp % 128 == 0 and Np % 128 == 0

    tm = _choose_tm(M, block_m)
    Mp = _round_up(M, tm)

    a_p = a.astype(jnp.bfloat16)
    if (Mp, Kp) != (M, K):
        a_p = jnp.pad(a_p, ((0, Mp - M), (0, Kp - K)))

    out_isz = jnp.dtype(out_dtype).itemsize
    # Double-buffered A/out tiles + resident W + bias; keep the scoped-VMEM
    # limit consistent with the real footprint (v7x only has 64 MiB physical).
    vmem_bytes = 2 * (tm * Kp * 2 + tm * Np * out_isz) + Kp * Np * 2 + Np * 4
    vmem_limit = min(max(4 * 1024 * 1024, 2 * vmem_bytes), 32 * 1024 * 1024)
    # TODO(synk): if channel counts grow so the resident (Kp, Np) weight block
    # no longer fits VMEM, add a trailing "arbitrary" K grid axis with an f32
    # accumulator scratch (pl.when init/finalize) instead of a resident W.

    grid = (Mp // tm,)
    kernel = functools.partial(_fused_matmul_kernel, apply_relu=apply_relu)
    out = pl.pallas_call(
        kernel,
        out_shape=jax.ShapeDtypeStruct((Mp, Np), out_dtype),
        grid=grid,
        in_specs=[
            pl.BlockSpec((tm, Kp), lambda i: (i, 0)),   # row tile of im2col A
            pl.BlockSpec((Kp, Np), lambda i: (0, 0)),   # resident weights
            pl.BlockSpec((1, Np), lambda i: (0, 0)),    # resident bias row
        ],
        out_specs=pl.BlockSpec((tm, Np), lambda i: (i, 0)),
        compiler_params=pltpu.CompilerParams(
            dimension_semantics=("parallel",),
            vmem_limit_bytes=vmem_limit,
        ),
        cost_estimate=pl.CostEstimate(
            flops=2 * Mp * Kp * Np,
            transcendentals=0,
            bytes_accessed=(Mp * Kp * 2 + Kp * Np * 2 + Np * 4 + Mp * Np * out_isz),
        ),
    )(a_p, w_p, bias_p)
    return out[:M, :n_out]


# ----------------------------------------------------------------------------
# Wrapper glue: NHWC im2col (slice/concat only), one-time parameter prep
# ----------------------------------------------------------------------------
def im2col_nhwc(x_nhwc, k):
    """Valid kxk stride-1 patches -> (B*Ho*Wo, k*k*C), column order (kh, kw, C)."""
    B, H, W, C = x_nhwc.shape
    Ho, Wo = H - k + 1, W - k + 1
    cols = [x_nhwc[:, i:i + Ho, j:j + Wo, :] for i in range(k) for j in range(k)]
    p = jnp.concatenate(cols, axis=-1)                 # (B, Ho, Wo, k*k*C)
    return p.reshape(B * Ho * Wo, k * k * C), Ho, Wo


def _pad_and_cast(w_mat, bias):
    """(K,N) weight / (N,) bias -> 128-padded (Kp,Np) bf16 / (1,Np) f32."""
    K, N = w_mat.shape
    Kp, Np = _round_up(K, 128), _round_up(N, 128)
    w_p = jnp.pad(w_mat, ((0, Kp - K), (0, Np - N))).astype(jnp.bfloat16)
    b_p = jnp.pad(bias.reshape(1, N), ((0, 0), (0, Np - N))).astype(jnp.float32)
    return w_p, b_p


def _prepare_conv_layer(w_conv, b_conv, gamma, beta, mean, var, eps=1e-5):
    """Fold eval-mode BN into the conv weight/bias and lay it out for im2col."""
    Cout, Cin, kh, kw = w_conv.shape
    # (Cout,Cin,kh,kw) -> (kh,kw,Cin,Cout) -> (kh*kw*Cin, Cout): matches im2col order.
    w_mat = w_conv.transpose(2, 3, 1, 0).reshape(kh * kw * Cin, Cout)
    inv_std = gamma / jnp.sqrt(var + eps)
    w_folded = w_mat * inv_std[None, :]
    bias = (b_conv - mean) * inv_std + beta
    return _pad_and_cast(w_folded, bias)


def prepare_params(params, in_shape, eps=1e-5):
    """One-time prep (hoisted out of the forward hot path): BN folding, weight
    transposes, head NHWC permutation, zero pads, dtype casts."""
    _, _, H, W = in_shape
    k = 5
    prep, meta = {}, {}
    for li in range(1, 4):
        w_conv = params[f"layer{li}"][0]
        prep[f"conv{li}"] = _prepare_conv_layer(*params[f"layer{li}"], eps=eps)
        meta[f"cout{li}"] = int(w_conv.shape[0])

    H3, W3 = H - 3 * (k - 1), W - 3 * (k - 1)
    C3 = meta["cout3"]
    head_w = params["head_w"]                          # (num_out, C3*H3*W3), torch NCHW-flatten cols
    head_w_t = (head_w.reshape(-1, C3, H3, W3)
                .transpose(0, 2, 3, 1)
                .reshape(-1, H3 * W3 * C3)).T          # (lin_in, num_out), NHWC-flatten rows
    prep["head_w_t"] = head_w_t.astype(jnp.float32)
    prep["head_b"] = params["head_b"].astype(jnp.float32)
    prep["head_pallas"] = _pad_and_cast(head_w_t, params["head_b"])
    meta["num_out"] = int(head_w.shape[0])
    meta["k"] = k
    return prep, meta


def make_cnn_forward(params, in_shape):
    """Returns (jitted forward(x, prep), prep). Static shape info lives in a closure."""
    prep, meta = prepare_params(params, in_shape)
    k = meta["k"]

    def forward(x, prep):
        B = x.shape[0]
        # NCHW (PyTorch I/O) -> NHWC once; bf16 activations through the stack.
        h = jnp.transpose(x, (0, 2, 3, 1)).astype(jnp.bfloat16)
        for li in range(1, 4):
            w_p, b_p = prep[f"conv{li}"]
            cout = meta[f"cout{li}"]
            a, Ho, Wo = im2col_nhwc(h, k)
            y = fused_matmul(a, w_p, b_p, cout, apply_relu=True,
                             out_dtype=jnp.bfloat16)
            h = y.reshape(B, Ho, Wo, cout)
        x_flat = h.reshape(B, -1)                       # NHWC flatten order
        if B >= 16:
            w_p, b_p = prep["head_pallas"]
            return fused_matmul(x_flat, w_p, b_p, meta["num_out"],
                                apply_relu=False, out_dtype=jnp.float32)
        # Tiny batch: a padded Pallas launch for B x num_out values is pure
        # overhead; let XLA's dot handle it (perf-review item).
        return x_flat.astype(jnp.float32) @ prep["head_w_t"] + prep["head_b"]

    return jax.jit(forward), prep


# ----------------------------------------------------------------------------
# Deterministic parameter init (synthetic; no checkpoint)
# ----------------------------------------------------------------------------
def init_params(key, in_channel, H, W, num_out):
    nf = in_channel * 5
    c_in = [in_channel, nf, 2 * nf]
    c_out = [nf, 2 * nf, 3 * nf]
    k = 5

    def out_sz(s):  # stride-1, valid, k=5
        return s - (k - 1)

    h3 = out_sz(out_sz(out_sz(H)))
    w3 = out_sz(out_sz(out_sz(W)))
    lin_in = c_out[2] * h3 * w3

    keys = jax.random.split(key, 3 * 6 + 2)
    params = {}
    ki = 0
    for li in range(3):
        ci, co = c_in[li], c_out[li]
        fan_in = ci * k * k
        w_conv = jax.random.normal(keys[ki], (co, ci, k, k), jnp.float32) / jnp.sqrt(fan_in); ki += 1
        b_conv = 0.1 * jax.random.normal(keys[ki], (co,), jnp.float32); ki += 1
        gamma = 1.0 + 0.1 * jax.random.normal(keys[ki], (co,), jnp.float32); ki += 1
        beta = 0.1 * jax.random.normal(keys[ki], (co,), jnp.float32); ki += 1
        mean = 0.1 * jax.random.normal(keys[ki], (co,), jnp.float32); ki += 1
        var = 0.5 + jax.random.uniform(keys[ki], (co,), jnp.float32); ki += 1
        params[f"layer{li + 1}"] = (w_conv, b_conv, gamma, beta, mean, var)

    params["head_w"] = jax.random.normal(keys[ki], (num_out, lin_in), jnp.float32) / jnp.sqrt(lin_in); ki += 1
    params["head_b"] = 0.1 * jax.random.normal(keys[ki], (num_out,), jnp.float32)
    return params


# ----------------------------------------------------------------------------
# Pure-JAX reference (for correctness check only)
# ----------------------------------------------------------------------------
def ref_forward(x, params, eps=1e-5):
    def layer(x, w, b, gamma, beta, mean, var):
        y = jax.lax.conv_general_dilated(
            x, w, window_strides=(1, 1), padding="VALID",
            dimension_numbers=("NCHW", "OIHW", "NCHW"))
        y = y + b[None, :, None, None]
        y = (y - mean[None, :, None, None]) / jnp.sqrt(var[None, :, None, None] + eps)
        y = gamma[None, :, None, None] * y + beta[None, :, None, None]
        return jnp.maximum(y, 0.0)

    x = layer(x, *params["layer1"])
    x = layer(x, *params["layer2"])
    x = layer(x, *params["layer3"])
    x = x.reshape(x.shape[0], -1)
    return x @ params["head_w"].T + params["head_b"]


if __name__ == "__main__":
    B, in_channel, H, W, num_out = 2, 4, 16, 16, 8
    key = jax.random.PRNGKey(0)
    k_x, k_p = jax.random.split(key)
    x = jax.random.normal(k_x, (B, in_channel, H, W), jnp.float32)
    params = init_params(k_p, in_channel, H, W, num_out)

    forward, prep = make_cnn_forward(params, (B, in_channel, H, W))
    out = jax.block_until_ready(forward(x, prep))

    ref = jax.block_until_ready(ref_forward(x, params))
    assert out.shape == (B, num_out), out.shape
    assert jnp.allclose(out, ref, rtol=2e-2, atol=2e-2), (out, ref)

    print("KERNEL_OK")
</pallas_src>

<mosaic_0001>
module attributes {stable_mosaic.version = 11 : i64} {
  func.func @_fused_matmul_kernel(%arg0: i32, %arg1: memref<288x128xbf16, #tpu.memory_space<vmem>>, %arg2: memref<128x128xbf16, #tpu.memory_space<vmem>>, %arg3: memref<1x128xf32, #tpu.memory_space<vmem>>, %arg4: memref<288x128xbf16, #tpu.memory_space<vmem>>) attributes {dimension_semantics = [#tpu.dimension_semantics<parallel>], iteration_bounds = array<i64: 1>, scalar_prefetch = 0 : i64, scratch_operands = 0 : i64, tpu.core_type = #tpu.core_type<tc>, window_params = [{transform_indices = @transform_0, window_bounds = array<i64: 288, 128>}, {pipeline_mode = #tpu.pipeline_mode<synchronous>, transform_indices = @transform_1, window_bounds = array<i64: 128, 128>}, {pipeline_mode = #tpu.pipeline_mode<synchronous>, transform_indices = @transform_2, window_bounds = array<i64: 1, 128>}, {transform_indices = @transform_3, window_bounds = array<i64: 288, 128>}]} {
    %c0 = arith.constant 0 : index
    %c0_0 = arith.constant 0 : index
    %0 = vector.load %arg1[%c0, %c0_0] : memref<288x128xbf16, #tpu.memory_space<vmem>>, vector<288x128xbf16>
    %c0_1 = arith.constant 0 : index
    %c0_2 = arith.constant 0 : index
    %1 = vector.load %arg2[%c0_1, %c0_2] : memref<128x128xbf16, #tpu.memory_space<vmem>>, vector<128x128xbf16>
    %cst = arith.constant dense<0.000000e+00> : vector<288x128xf32>
    %2 = tpu.matmul %0, %1, %cst {dimension_numbers = #tpu.dot_dimension_numbers<[1], [0], [0], [1], [0, 0, 1, 1], [], []>} : vector<288x128xbf16>, vector<128x128xbf16>, vector<288x128xf32> -> vector<288x128xf32>
    %c0_3 = arith.constant 0 : index
    %c0_4 = arith.constant 0 : index
    %3 = vector.load %arg3[%c0_3, %c0_4] : memref<1x128xf32, #tpu.memory_space<vmem>>, vector<1x128xf32>
    %4 = vector.broadcast %3 : vector<1x128xf32> to vector<288x128xf32>
    %5 = arith.addf %2, %4 : vector<288x128xf32>
    %cst_5 = arith.constant 0.000000e+00 : f32
    %6 = vector.broadcast %cst_5 : f32 to vector<288x128xf32>
    %7 = arith.maximumf %5, %6 : vector<288x128xf32>
    %8 = arith.truncf %7 : vector<288x128xf32> to vector<288x128xbf16>
    %c0_6 = arith.constant 0 : index
    %c0_7 = arith.constant 0 : index
    %9 = vector.load %arg4[%c0_6, %c0_7] : memref<288x128xbf16, #tpu.memory_space<vmem>>, vector<288x128xbf16>
    tpu.vector_store %arg4[%c0_6, %c0_7], %8 {strides = array<i32>} : memref<288x128xbf16, #tpu.memory_space<vmem>>, vector<288x128xbf16>,
    return
  }
  func.func @transform_0(%arg0: i32) -> (i32, i32) {
    %c0_i32 = arith.constant 0 : i32
    %c0_i32_0 = arith.constant 0 : i32
    return %arg0, %c0_i32 : i32, i32
  }
  func.func @transform_1(%arg0: i32) -> (i32, i32) {
    %c0_i32 = arith.constant 0 : i32
    %c0_i32_0 = arith.constant 0 : i32
    %c0_i32_1 = arith.constant 0 : i32
    return %c0_i32, %c0_i32_0 : i32, i32
  }
  func.func @transform_2(%arg0: i32) -> (i32, i32) {
    %c0_i32 = arith.constant 0 : i32
    %c0_i32_0 = arith.constant 0 : i32
    %c0_i32_1 = arith.constant 0 : i32
    return %c0_i32, %c0_i32_0 : i32, i32
  }
  func.func @transform_3(%arg0: i32) -> (i32, i32) {
    %c0_i32 = arith.constant 0 : i32
    %c0_i32_0 = arith.constant 0 : i32
    return %arg0, %c0_i32 : i32, i32
  }
}

module attributes {stable_mosaic.version = 11 : i64} {
  func.func @_fused_matmul_kernel(%arg0: i32, %arg1: memref<128x512xbf16, #tpu.memory_space<vmem>>, %arg2: memref<512x128xbf16, #tpu.memory_space<vmem>>, %arg3: memref<1x128xf32, #tpu.memory_space<vmem>>, %arg4: memref<128x128xbf16, #tpu.memory_space<vmem>>) attributes {dimension_semantics = [#tpu.dimension_semantics<parallel>], iteration_bounds = array<i64: 1>, scalar_prefetch = 0 : i64, scratch_operands = 0 : i64, tpu.core_type = #tpu.core_type<tc>, window_params = [{transform_indices = @transform_0, window_bounds = array<i64: 128, 512>}, {pipeline_mode = #tpu.pipeline_mode<synchronous>, transform_indices = @transform_1, window_bounds = array<i64: 512, 128>}, {pipeline_mode = #tpu.pipeline_mode<synchronous>, transform_indices = @transform_2, window_bounds = array<i64: 1, 128>}, {transform_indices = @transform_3, window_bounds = array<i64: 128, 128>}]} {
    %c0 = arith.constant 0 : index
    %c0_0 = arith.constant 0 : index
    %0 = vector.load %arg1[%c0, %c0_0] : memref<128x512xbf16, #tpu.memory_space<vmem>>, vector<128x512xbf16>
    %c0_1 = arith.constant 0 : index
    %c0_2 = arith.constant 0 : index
    %1 = vector.load %arg2[%c0_1, %c0_2] : memref<512x128xbf16, #tpu.memory_space<vmem>>, vector<512x128xbf16>
    %cst = arith.constant dense<0.000000e+00> : vector<128x128xf32>
    %2 = tpu.matmul %0, %1, %cst {dimension_numbers = #tpu.dot_dimension_numbers<[1], [0], [0], [1], [0, 0, 1, 1], [], []>} : vector<128x512xbf16>, vector<512x128xbf16>, vector<128x128xf32> -> vector<128x128xf32>
    %c0_3 = arith.constant 0 : index
    %c0_4 = arith.constant 0 : index
    %3 = vector.load %arg3[%c0_3, %c0_4] : memref<1x128xf32, #tpu.memory_space<vmem>>, vector<1x128xf32>
    %4 = vector.broadcast %3 : vector<1x128xf32> to vector<128x128xf32>
    %5 = arith.addf %2, %4 : vector<128x128xf32>
    %cst_5 = arith.constant 0.000000e+00 : f32
    %6 = vector.broadcast %cst_5 : f32 to vector<128x128xf32>
    %7 = arith.maximumf %5, %6 : vector<128x128xf32>
    %8 = arith.truncf %7 : vector<128x128xf32> to vector<128x128xbf16>
    %c0_6 = arith.constant 0 : index
    %c0_7 = arith.constant 0 : index
    %9 = vector.load %arg4[%c0_6, %c0_7] : memref<128x128xbf16, #tpu.memory_space<vmem>>, vector<128x128xbf16>
    tpu.vector_store %arg4[%c0_6, %c0_7], %8 {strides = array<i32>} : memref<128x128xbf16, #tpu.memory_space<vmem>>, vector<128x128xbf16>,
    return
  }
  func.func @transform_0(%arg0: i32) -> (i32, i32) {
    %c0_i32 = arith.constant 0 : i32
    %c0_i32_0 = arith.constant 0 : i32
    return %arg0, %c0_i32 : i32, i32
  }
  func.func @transform_1(%arg0: i32) -> (i32, i32) {
    %c0_i32 = arith.constant 0 : i32
    %c0_i32_0 = arith.constant 0 : i32
    %c0_i32_1 = arith.constant 0 : i32
    return %c0_i32, %c0_i32_0 : i32, i32
  }
  func.func @transform_2(%arg0: i32) -> (i32, i32) {
    %c0_i32 = arith.constant 0 : i32
    %c0_i32_0 = arith.constant 0 : i32
    %c0_i32_1 = arith.constant 0 : i32
    return %c0_i32, %c0_i32_0 : i32, i32
  }
  func.func @transform_3(%arg0: i32) -> (i32, i32) {
    %c0_i32 = arith.constant 0 : i32
    %c0_i32_0 = arith.constant 0 : i32
    return %arg0, %c0_i32 : i32, i32
  }
}

module attributes {stable_mosaic.version = 11 : i64} {
  func.func @_fused_matmul_kernel(%arg0: i32, %arg1: memref<32x1024xbf16, #tpu.memory_space<vmem>>, %arg2: memref<1024x128xbf16, #tpu.memory_space<vmem>>, %arg3: memref<1x128xf32, #tpu.memory_space<vmem>>, %arg4: memref<32x128xbf16, #tpu.memory_space<vmem>>) attributes {dimension_semantics = [#tpu.dimension_semantics<parallel>], iteration_bounds = array<i64: 1>, scalar_prefetch = 0 : i64, scratch_operands = 0 : i64, tpu.core_type = #tpu.core_type<tc>, window_params = [{transform_indices = @transform_0, window_bounds = array<i64: 32, 1024>}, {pipeline_mode = #tpu.pipeline_mode<synchronous>, transform_indices = @transform_1, window_bounds = array<i64: 1024, 128>}, {pipeline_mode = #tpu.pipeline_mode<synchronous>, transform_indices = @transform_2, window_bounds = array<i64: 1, 128>}, {transform_indices = @transform_3, window_bounds = array<i64: 32, 128>}]} {
    %c0 = arith.constant 0 : index
    %c0_0 = arith.constant 0 : index
    %0 = vector.load %arg1[%c0, %c0_0] : memref<32x1024xbf16, #tpu.memory_space<vmem>>, vector<32x1024xbf16>
    %c0_1 = arith.constant 0 : index
    %c0_2 = arith.constant 0 : index
    %1 = vector.load %arg2[%c0_1, %c0_2] : memref<1024x128xbf16, #tpu.memory_space<vmem>>, vector<1024x128xbf16>
    %cst = arith.constant dense<0.000000e+00> : vector<32x128xf32>
    %2 = tpu.matmul %0, %1, %cst {dimension_numbers = #tpu.dot_dimension_numbers<[1], [0], [0], [1], [0, 0, 1, 1], [], []>} : vector<32x1024xbf16>, vector<1024x128xbf16>, vector<32x128xf32> -> vector<32x128xf32>
    %c0_3 = arith.constant 0 : index
    %c0_4 = arith.constant 0 : index
    %3 = vector.load %arg3[%c0_3, %c0_4] : memref<1x128xf32, #tpu.memory_space<vmem>>, vector<1x128xf32>
    %4 = vector.broadcast %3 : vector<1x128xf32> to vector<32x128xf32>
    %5 = arith.addf %2, %4 : vector<32x128xf32>
    %cst_5 = arith.constant 0.000000e+00 : f32
    %6 = vector.broadcast %cst_5 : f32 to vector<32x128xf32>
    %7 = arith.maximumf %5, %6 : vector<32x128xf32>
    %8 = arith.truncf %7 : vector<32x128xf32> to vector<32x128xbf16>
    %c0_6 = arith.constant 0 : index
    %c0_7 = arith.constant 0 : index
    %9 = vector.load %arg4[%c0_6, %c0_7] : memref<32x128xbf16, #tpu.memory_space<vmem>>, vector<32x128xbf16>
    tpu.vector_store %arg4[%c0_6, %c0_7], %8 {strides = array<i32>} : memref<32x128xbf16, #tpu.memory_space<vmem>>, vector<32x128xbf16>,
    return
  }
  func.func @transform_0(%arg0: i32) -> (i32, i32) {
    %c0_i32 = arith.constant 0 : i32
    %c0_i32_0 = arith.constant 0 : i32
    return %arg0, %c0_i32 : i32, i32
  }
  func.func @transform_1(%arg0: i32) -> (i32, i32) {
    %c0_i32 = arith.constant 0 : i32
    %c0_i32_0 = arith.constant 0 : i32
    %c0_i32_1 = arith.constant 0 : i32
    return %c0_i32, %c0_i32_0 : i32, i32
  }
  func.func @transform_2(%arg0: i32) -> (i32, i32) {
    %c0_i32 = arith.constant 0 : i32
    %c0_i32_0 = arith.constant 0 : i32
    %c0_i32_1 = arith.constant 0 : i32
    return %c0_i32, %c0_i32_0 : i32, i32
  }
  func.func @transform_3(%arg0: i32) -> (i32, i32) {
    %c0_i32 = arith.constant 0 : i32
    %c0_i32_0 = arith.constant 0 : i32
    return %arg0, %c0_i32 : i32, i32
  }
}

</mosaic_0001>

<bundles_post_ra>
// kernel: forward.3
= control target key start
LH: loop header
LB: loop body
LE: loop exit
PB: predicated region body
PF: predicated region fallthrough
CT: control target
= control target key end

     0   :  { %s892_s1 = inlined_call_operand.vmem [shape: bf16[128,128], index: 1, kind: input, shape index: {}]   ;;  %s893_s2 = inlined_call_operand.vmem [shape: f32[1,128], index: 2, kind: input, shape index: {}]   ;;  %s894_s0 = inlined_call_operand.vmem [shape: bf16[288,128], index: 0, kind: input, shape index: {}]   ;;  %s895_s3 = inlined_call_operand.vmem [shape: bf16[288,128], index: 3, kind: output, shape index: {}]  }
   0x1   :  { %v566_v0 = vld [vmem:[%s892_s1 + $0x38] sm:$0xff]  ;;  %v565_v1 = vld [vmem:[%s892_s1 + $0x30] sm:$0xff]  ;;  %v564_v2 = vld [vmem:[%s892_s1 + $0x28] sm:$0xff] }
   0x2   :  { %675 = vmatpush.bf16.msra.mxu2 %v566_v0  ;;  %676 = vmatpush.bf16.msra.mxu3 %v566_v0  ;;  %v563_v3 = vld [vmem:[%s892_s1 + $0x20] sm:$0xff]  ;;  %v562_v4 = vld [vmem:[%s892_s1 + $0x18] sm:$0xff]  ;;  %v561_v5 = vld [vmem:[%s892_s1 + $0x10] sm:$0xff] }
   0x3   :  { %226 = vmatpush.bf16.msra.mxu0 %v566_v0  ;;  %674 = vmatpush.bf16.msra.mxu1 %v566_v0  ;;  %v560_v6 = vld [vmem:[%s892_s1 + $0x8] sm:$0xff]  ;;  %v559_v7 = vld [vmem:[%s892_s1] sm:$0xff]  ;;  %v555_v13 = vld [vmem:[%s894_s0 + $0x70] sm:$0xff] }
   0x4   :  { %v549_v8 = vld [vmem:[%s894_s0 + $0x40] sm:$0xff]  ;;  %v554_v9 = vld [vmem:[%s894_s0 + $0x68] sm:$0xff]  ;;  %v551_v16 = vld [vmem:[%s894_s0 + $0x50] sm:$0xff] }
   0x5   :  { %v541_v10 = vld [vmem:[%s894_s0] sm:$0xff]  ;;  %v550_v12 = vld [vmem:[%s894_s0 + $0x48] sm:$0xff]  ;;  %v556_v17 = vld [vmem:[%s894_s0 + $0x78] sm:$0xff] }
   0x6   :  { %678 = vmatpush.bf16.msra.mxu2 %v565_v1  ;;  %679 = vmatpush.bf16.msra.mxu3 %v565_v1  ;;  %v545_v11 = vld [vmem:[%s894_s0 + $0x20] sm:$0xff]  ;;  %v542_v14 = vld [vmem:[%s894_s0 + $0x8] sm:$0xff]  ;;  %v543_v18 = vld [vmem:[%s894_s0 + $0x10] sm:$0xff] }
   0x7   :  { %227 = vmatpush.bf16.msra.mxu0 %v565_v1  ;;  %677 = vmatpush.bf16.msra.mxu1 %v565_v1  ;;  %v546_v15 = vld [vmem:[%s894_s0 + $0x28] sm:$0xff]  ;;  %v547_v19 = vld [vmem:[%s894_s0 + $0x30] sm:$0xff]  ;;  %v552_v20 = vld [vmem:[%s894_s0 + $0x58] sm:$0xff] }
   0x8   :  { %v557_v21 = vld [vmem:[%s894_s0 + $0x80] sm:$0xff]  ;;  %v544_v22 = vld [vmem:[%s894_s0 + $0x18] sm:$0xff]  ;;  %v558_v25 = vld [vmem:[%s894_s0 + $0x88] sm:$0xff] }
   0x9   :  { %v548_v23 = vld [vmem:[%s894_s0 + $0x38] sm:$0xff]  ;;  %v553_v24 = vld [vmem:[%s894_s0 + $0x60] sm:$0xff] }
   0xa   :  { %681 = vmatpush.bf16.msra.mxu2 %v564_v2  ;;  %682 = vmatpush.bf16.msra.mxu3 %v564_v2  ;;  %v800_v28 = vld [vmem:[%s893_s2] ss:$0 sm:$0xff] }
   0xb   :  { %228 = vmatpush.bf16.msra.mxu0 %v564_v2  ;;  %680 = vmatpush.bf16.msra.mxu1 %v564_v2 }
   0xe   :  { %684 = vmatpush.bf16.msra.mxu2 %v563_v3  ;;  %685 = vmatpush.bf16.msra.mxu3 %v563_v3 }
   0xf   :  { %229 = vmatpush.bf16.msra.mxu0 %v563_v3  ;;  %683 = vmatpush.bf16.msra.mxu1 %v563_v3 }
  0x12   :  { %687 = vmatpush.bf16.msra.mxu2 %v562_v4  ;;  %688 = vmatpush.bf16.msra.mxu3 %v562_v4 }
  0x13   :  { %230 = vmatpush.bf16.msra.mxu0 %v562_v4  ;;  %686 = vmatpush.bf16.msra.mxu1 %v562_v4 }
  0x16   :  { %690 = vmatpush.bf16.msra.mxu2 %v561_v5  ;;  %691 = vmatpush.bf16.msra.mxu3 %v561_v5 }
  0x17   :  { %231 = vmatpush.bf16.msra.mxu0 %v561_v5  ;;  %689 = vmatpush.bf16.msra.mxu1 %v561_v5 }
  0x1a   :  { %693 = vmatpush.bf16.msra.mxu2 %v560_v6  ;;  %694 = vmatpush.bf16.msra.mxu3 %v560_v6 }
  0x1b   :  { %232 = vmatpush.bf16.msra.mxu0 %v560_v6  ;;  %692 = vmatpush.bf16.msra.mxu1 %v560_v6 }
  0x1e   :  { %696 = vmatpush.bf16.msra.mxu2 %v559_v7  ;;  %697 = vmatpush.bf16.msra.mxu3 %v559_v7 }
  0x1f   :  { %233 = vmatpush.bf16.msra.mxu0 %v559_v7  ;;  %695 = vmatpush.bf16.msra.mxu1 %v559_v7 }
  0x21   :  { %274 = vmatmul.bf16.vlgmr.msra.gmra.mxu2 %v549_v8  ;;  %299 = vmatmul.bf16.vlgmr.msra.gmra.mxu3 %v554_v9 }
  0x22   :  { %234 = vmatmul.bf16.vlgmr.msra.gmra.mxu0 %v541_v10  ;;  %254 = vmatmul.bf16.vlgmr.msra.gmra.mxu1 %v545_v11 }
  0x31   :  { %279 = vmatmul.bf16.gmra.mxu2 %v550_v12  ;;  %304 = vmatmul.bf16.gmra.mxu3 %v555_v13 }
  0x32   :  { %239 = vmatmul.bf16.gmra.mxu0 %v542_v14  ;;  %259 = vmatmul.bf16.gmra.mxu1 %v546_v15 }
  0x41   :  { %284 = vmatmul.bf16.gmra.mxu2 %v551_v16  ;;  %309 = vmatmul.bf16.gmra.mxu3 %v556_v17 }
  0x42   :  { %244 = vmatmul.bf16.gmra.mxu0 %v543_v18  ;;  %264 = vmatmul.bf16.gmra.mxu1 %v547_v19 }
  0x51   :  { %289 = vmatmul.bf16.gmra.mxu2 %v552_v20  ;;  %314 = vmatmul.bf16.gmra.mxu3 %v557_v21 }
  0x52   :  { %249 = vmatmul.bf16.gmra.mxu0 %v544_v22  ;;  %269 = vmatmul.bf16.gmra.mxu1 %v548_v23 }
  0x61   :  { %294 = vmatmul.bf16.gmra.mxu2 %v553_v24  ;;  %319 = vmatmul.bf16.gmra.mxu3 %v558_v25 }
  0x9f   :  { %v235_v26 = vpop.f32.mrf.mxu0  ;;  %v255_v27 = vpop.f32.mrf.mxu1 }
  0xa0   :  { %v236_v31 = vadd.f32 %v800_v28, %v235_v26  ;;  %v256_v32 = vadd.f32 %v800_v28, %v255_v27 }
  0xa2   :  { %v325_v35 = vmax.f32 %v236_v31, 0.0  ;;  %v333_v36 = vmax.f32 %v256_v32, 0.0 }
  0xa4   :  { %v275_v29 = vpop.f32.mrf.mxu2  ;;  %v300_v30 = vpop.f32.mrf.mxu3 }
  0xa5   :  { %v276_v41 = vadd.f32 %v800_v28, %v275_v29  ;;  %v301_v42 = vadd.f32 %v800_v28, %v300_v30 }
  0xa7   :  { %v237_v33 = vpop.f32.mrf.mxu0  ;;  %v257_v34 = vpop.f32.mrf.mxu1  ;;  %v341_v49 = vmax.f32 %v276_v41, 0.0  ;;  %v351_v50 = vmax.f32 %v301_v42, 0.0 }
  0xa8   :  { %v238_v37 = vadd.f32 %v800_v28, %v237_v33  ;;  %v258_v38 = vadd.f32 %v800_v28, %v257_v34 }
  0xaa   :  { %v326_v39 = vmax.f32 %v238_v37, 0.0  ;;  %v334_v40 = vmax.f32 %v258_v38, 0.0 }
  0xac   :  { %v277_v43 = vpop.f32.mrf.mxu2  ;;  %v302_v44 = vpop.f32.mrf.mxu3  ;;  %v570_v45 = vpack.c.bf16 %v326_v39, %v325_v35  ;;  %v590_v46 = vpack.c.bf16 %v334_v40, %v333_v36 }
  0xad   :  { %v278_v47 = vadd.f32 %v800_v28, %v277_v43  ;;  %v303_v48 = vadd.f32 %v800_v28, %v302_v44 }
  0xae   :  { %571 = vst [vmem:[%s895_s3] sm:$0xff] %v570_v45  }
  0xaf   :  { %v342_v51 = vmax.f32 %v278_v47, 0.0  ;;  %v352_v52 = vmax.f32 %v303_v48, 0.0  ;;  %660 = vst [vmem:[%s895_s3 + $0x20] sm:$0xff] %v590_v46   ;;  %v240_v53 = vpop.f32.mrf.mxu0  ;;  %v260_v54 = vpop.f32.mrf.mxu1 }
  0xb0   :  { %v241_v59 = vadd.f32 %v800_v28, %v240_v53  ;;  %v261_v60 = vadd.f32 %v800_v28, %v260_v54 }
  0xb1   :  { %v610_v55 = vpack.c.bf16 %v342_v51, %v341_v49  ;;  %v635_v56 = vpack.c.bf16 %v352_v52, %v351_v50 }
  0xb2   :  { %v327_v63 = vmax.f32 %v241_v59, 0.0  ;;  %v335_v0 = vmax.f32 %v261_v60, 0.0 }
  0xb3   :  { %664 = vst [vmem:[%s895_s3 + $0x40] sm:$0xff] %v610_v55  }
  0xb4   :  { %669 = vst [vmem:[%s895_s3 + $0x68] sm:$0xff] %v635_v56   ;;  %v280_v57 = vpop.f32.mrf.mxu2  ;;  %v305_v58 = vpop.f32.mrf.mxu3 }
  0xb5   :  { %v281_v5 = vadd.f32 %v800_v28, %v280_v57  ;;  %v306_v6 = vadd.f32 %v800_v28, %v305_v58 }
  0xb7   :  { %v242_v61 = vpop.f32.mrf.mxu0  ;;  %v262_v62 = vpop.f32.mrf.mxu1  ;;  %v343_v13 = vmax.f32 %v281_v5, 0.0  ;;  %v353_v14 = vmax.f32 %v306_v6, 0.0 }
  0xb8   :  { %v243_v1 = vadd.f32 %v800_v28, %v242_v61  ;;  %v263_v2 = vadd.f32 %v800_v28, %v262_v62 }
  0xba   :  { %v328_v3 = vmax.f32 %v243_v1, 0.0  ;;  %v336_v4 = vmax.f32 %v263_v2, 0.0 }
  0xbc   :  { %v282_v7 = vpop.f32.mrf.mxu2  ;;  %v307_v8 = vpop.f32.mrf.mxu3  ;;  %v575_v9 = vpack.c.bf16 %v328_v3, %v327_v63  ;;  %v595_v10 = vpack.c.bf16 %v336_v4, %v335_v0 }
  0xbd   :  { %v283_v11 = vadd.f32 %v800_v28, %v282_v7  ;;  %v308_v12 = vadd.f32 %v800_v28, %v307_v8 }
  0xbe   :  { %657 = vst [vmem:[%s895_s3 + $0x8] sm:$0xff] %v575_v9  }
  0xbf   :  { %v344_v15 = vmax.f32 %v283_v11, 0.0  ;;  %v354_v16 = vmax.f32 %v308_v12, 0.0  ;;  %661 = vst [vmem:[%s895_s3 + $0x28] sm:$0xff] %v595_v10   ;;  %v245_v17 = vpop.f32.mrf.mxu0  ;;  %v265_v18 = vpop.f32.mrf.mxu1 }
  0xc0   :  { %v246_v23 = vadd.f32 %v800_v28, %v245_v17  ;;  %v266_v24 = vadd.f32 %v800_v28, %v265_v18 }
  0xc1   :  { %v615_v19 = vpack.c.bf16 %v344_v15, %v343_v13  ;;  %v640_v20 = vpack.c.bf16 %v354_v16, %v353_v14 }
  0xc2   :  { %v329_v27 = vmax.f32 %v246_v23, 0.0  ;;  %v337_v29 = vmax.f32 %v266_v24, 0.0 }
  0xc3   :  { %665 = vst [vmem:[%s895_s3 + $0x48] sm:$0xff] %v615_v19  }
  0xc4   :  { %670 = vst [vmem:[%s895_s3 + $0x70] sm:$0xff] %v640_v20   ;;  %v285_v21 = vpop.f32.mrf.mxu2  ;;  %v310_v22 = vpop.f32.mrf.mxu3 }
  0xc5   :  { %v286_v34 = vadd.f32 %v800_v28, %v285_v21  ;;  %v311_v35 = vadd.f32 %v800_v28, %v310_v22 }
  0xc7   :  { %v247_v25 = vpop.f32.mrf.mxu0  ;;  %v267_v26 = vpop.f32.mrf.mxu1  ;;  %v345_v42 = vmax.f32 %v286_v34, 0.0  ;;  %v355_v43 = vmax.f32 %v311_v35, 0.0 }
  0xc8   :  { %v248_v30 = vadd.f32 %v800_v28, %v247_v25  ;;  %v268_v31 = vadd.f32 %v800_v28, %v267_v26 }
  0xca   :  { %v330_v32 = vmax.f32 %v248_v30, 0.0  ;;  %v338_v33 = vmax.f32 %v268_v31, 0.0 }
  0xcc   :  { %v287_v36 = vpop.f32.mrf.mxu2  ;;  %v312_v37 = vpop.f32.mrf.mxu3  ;;  %v580_v38 = vpack.c.bf16 %v330_v32, %v329_v27  ;;  %v600_v39 = vpack.c.bf16 %v338_v33, %v337_v29 }
  0xcd   :  { %v288_v40 = vadd.f32 %v800_v28, %v287_v36  ;;  %v313_v41 = vadd.f32 %v800_v28, %v312_v37 }
  0xce   :  { %658 = vst [vmem:[%s895_s3 + $0x10] sm:$0xff] %v580_v38  }
  0xcf   :  { %v346_v44 = vmax.f32 %v288_v40, 0.0  ;;  %v356_v45 = vmax.f32 %v313_v41, 0.0  ;;  %662 = vst [vmem:[%s895_s3 + $0x30] sm:$0xff] %v600_v39   ;;  %v250_v46 = vpop.f32.mrf.mxu0  ;;  %v270_v47 = vpop.f32.mrf.mxu1 }
  0xd0   :  { %v251_v52 = vadd.f32 %v800_v28, %v250_v46  ;;  %v271_v53 = vadd.f32 %v800_v28, %v270_v47 }
  0xd1   :  { %v620_v48 = vpack.c.bf16 %v346_v44, %v345_v42  ;;  %v645_v49 = vpack.c.bf16 %v356_v45, %v355_v43 }
  0xd2   :  { %v331_v56 = vmax.f32 %v251_v52, 0.0  ;;  %v339_v57 = vmax.f32 %v271_v53, 0.0 }
  0xd3   :  { %666 = vst [vmem:[%s895_s3 + $0x50] sm:$0xff] %v620_v48  }
  0xd4   :  { %671 = vst [vmem:[%s895_s3 + $0x78] sm:$0xff] %v645_v49   ;;  %v290_v50 = vpop.f32.mrf.mxu2  ;;  %v315_v51 = vpop.f32.mrf.mxu3 }
  0xd5   :  { %v291_v62 = vadd.f32 %v800_v28, %v290_v50  ;;  %v316_v63 = vadd.f32 %v800_v28, %v315_v51 }
  0xd7   :  { %v252_v54 = vpop.f32.mrf.mxu0  ;;  %v272_v55 = vpop.f32.mrf.mxu1  ;;  %v347_v6 = vmax.f32 %v291_v62, 0.0  ;;  %v357_v7 = vmax.f32 %v316_v63, 0.0 }
  0xd8   :  { %v253_v58 = vadd.f32 %v800_v28, %v252_v54  ;;  %v273_v59 = vadd.f32 %v800_v28, %v272_v55 }
  0xda   :  { %v332_v60 = vmax.f32 %v253_v58, 0.0  ;;  %v340_v61 = vmax.f32 %v273_v59, 0.0 }
  0xdc   :  { %v292_v0 = vpop.f32.mrf.mxu2  ;;  %v317_v1 = vpop.f32.mrf.mxu3  ;;  %v585_v2 = vpack.c.bf16 %v332_v60, %v331_v56  ;;  %v605_v3 = vpack.c.bf16 %v340_v61, %v339_v57 }
  0xdd   :  { %v293_v4 = vadd.f32 %v800_v28, %v292_v0  ;;  %v318_v5 = vadd.f32 %v800_v28, %v317_v1 }
  0xde   :  { %659 = vst [vmem:[%s895_s3 + $0x18] sm:$0xff] %v585_v2  }
  0xdf   :  { %v348_v8 = vmax.f32 %v293_v4, 0.0  ;;  %v358_v9 = vmax.f32 %v318_v5, 0.0  ;;  %663 = vst [vmem:[%s895_s3 + $0x38] sm:$0xff] %v605_v3  }
  0xe1   :  { %v625_v10 = vpack.c.bf16 %v348_v8, %v347_v6  ;;  %v650_v11 = vpack.c.bf16 %v358_v9, %v357_v7 }
  0xe3   :  { %667 = vst [vmem:[%s895_s3 + $0x58] sm:$0xff] %v625_v10  }
  0xe4   :  { %672 = vst [vmem:[%s895_s3 + $0x80] sm:$0xff] %v650_v11   ;;  %v295_v12 = vpop.f32.mrf.mxu2  ;;  %v320_v13 = vpop.f32.mrf.mxu3 }
  0xe5   :  { %v296_v14 = vadd.f32 %v800_v28, %v295_v12  ;;  %v321_v15 = vadd.f32 %v800_v28, %v320_v13 }
  0xe7   :  { %v349_v20 = vmax.f32 %v296_v14, 0.0  ;;  %v359_v21 = vmax.f32 %v321_v15, 0.0 }
  0xec   :  { %v297_v16 = vpop.f32.mrf.mxu2  ;;  %v322_v17 = vpop.f32.mrf.mxu3 }
  0xed   :  { %v298_v18 = vadd.f32 %v800_v28, %v297_v16  ;;  %v323_v19 = vadd.f32 %v800_v28, %v322_v17 }
  0xef   :  { %v350_v22 = vmax.f32 %v298_v18, 0.0  ;;  %v360_v23 = vmax.f32 %v323_v19, 0.0 }
  0xf1   :  { %v630_v24 = vpack.c.bf16 %v350_v22, %v349_v20  ;;  %v655_v25 = vpack.c.bf16 %v360_v23, %v359_v21 }
  0xf3   :  { %668 = vst [vmem:[%s895_s3 + $0x60] sm:$0xff] %v630_v24  }
  0xf4   :  { %673 = vst [vmem:[%s895_s3 + $0x88] sm:$0xff] %v655_v25  }

// kernel: forward.4
= control target key start
LH: loop header
LB: loop body
LE: loop exit
PB: predicated region body
PF: predicated region fallthrough
CT: control target
= control target key end

     0   :  { %s1435_s1 = inlined_call_operand.vmem [shape: bf16[512,128], index: 1, kind: input, shape index: {}]   ;;  %s1436_s2 = inlined_call_operand.vmem [shape: f32[1,128], index: 2, kind: input, shape index: {}]   ;;  %s1437_s0 = inlined_call_operand.vmem [shape: bf16[128,512], index: 0, kind: input, shape index: {}]   ;;  %s1438_s3 = inlined_call_operand.vmem [shape: bf16[128,128], index: 3, kind: output, shape index: {}]  }
   0x1   :  { %v1009_v0 = vld [vmem:[%s1435_s1 + $0x38] sm:$0xff]  ;;  %v1008_v4 = vld [vmem:[%s1435_s1 + $0x30] sm:$0xff]  ;;  %v1007_v8 = vld [vmem:[%s1435_s1 + $0x28] sm:$0xff] }
   0x2   :  { %v1017_v1 = vld [vmem:[%s1435_s1 + $0x78] sm:$0xff]  ;;  %466 = vmatpush.bf16.msra.mxu0 %v1009_v0  ;;  %v1016_v5 = vld [vmem:[%s1435_s1 + $0x70] sm:$0xff]  ;;  %v1015_v9 = vld [vmem:[%s1435_s1 + $0x68] sm:$0xff] }
   0x3   :  { %v1025_v2 = vld [vmem:[%s1435_s1 + $0xb8] sm:$0xff]  ;;  %515 = vmatpush.bf16.msra.mxu1 %v1017_v1  ;;  %v1024_v6 = vld [vmem:[%s1435_s1 + $0xb0] sm:$0xff]  ;;  %v1023_v10 = vld [vmem:[%s1435_s1 + $0xa8] sm:$0xff] }
   0x4   :  { %v1033_v3 = vld [vmem:[%s1435_s1 + $0xf8] sm:$0xff]  ;;  %564 = vmatpush.bf16.msra.mxu2 %v1025_v2  ;;  %v1032_v7 = vld [vmem:[%s1435_s1 + $0xf0] sm:$0xff]  ;;  %v1031_v11 = vld [vmem:[%s1435_s1 + $0xe8] sm:$0xff] }
   0x5   :  { %613 = vmatpush.bf16.msra.mxu3 %v1033_v3  ;;  %v1006_v12 = vld [vmem:[%s1435_s1 + $0x20] sm:$0xff]  ;;  %v1005_v16 = vld [vmem:[%s1435_s1 + $0x18] sm:$0xff]  ;;  %v1004_v20 = vld [vmem:[%s1435_s1 + $0x10] sm:$0xff] }
   0x6   :  { %467 = vmatpush.bf16.msra.mxu0 %v1008_v4  ;;  %v1014_v13 = vld [vmem:[%s1435_s1 + $0x60] sm:$0xff]  ;;  %v1013_v17 = vld [vmem:[%s1435_s1 + $0x58] sm:$0xff]  ;;  %v1012_v21 = vld [vmem:[%s1435_s1 + $0x50] sm:$0xff] }
   0x7   :  { %516 = vmatpush.bf16.msra.mxu1 %v1016_v5  ;;  %v1022_v14 = vld [vmem:[%s1435_s1 + $0xa0] sm:$0xff]  ;;  %v1021_v18 = vld [vmem:[%s1435_s1 + $0x98] sm:$0xff]  ;;  %v1020_v22 = vld [vmem:[%s1435_s1 + $0x90] sm:$0xff] }
   0x8   :  { %565 = vmatpush.bf16.msra.mxu2 %v1024_v6  ;;  %v1030_v15 = vld [vmem:[%s1435_s1 + $0xe0] sm:$0xff]  ;;  %v1029_v19 = vld [vmem:[%s1435_s1 + $0xd8] sm:$0xff]  ;;  %v1028_v23 = vld [vmem:[%s1435_s1 + $0xd0] sm:$0xff] }
   0x9   :  { %614 = vmatpush.bf16.msra.mxu3 %v1032_v7  ;;  %v1003_v24 = vld [vmem:[%s1435_s1 + $0x8] sm:$0xff]  ;;  %v1002_v28 = vld [vmem:[%s1435_s1] sm:$0xff]  ;;  %v972_v33 = vld [vmem:[%s1437_s0 + $0xc] sm:$0xf0] }
   0xa   :  { %468 = vmatpush.bf16.msra.mxu0 %v1007_v8  ;;  %v1011_v25 = vld [vmem:[%s1435_s1 + $0x48] sm:$0xff]  ;;  %v1010_v29 = vld [vmem:[%s1435_s1 + $0x40] sm:$0xff]  ;;  %v718_v35 = vld [vmem:[%s1437_s0 + $0x10] sm:$0xf0] }
   0xb   :  { %517 = vmatpush.bf16.msra.mxu1 %v1015_v9  ;;  %v1019_v26 = vld [vmem:[%s1435_s1 + $0x88] sm:$0xff]  ;;  %v1018_v30 = vld [vmem:[%s1435_s1 + $0x80] sm:$0xff]  ;;  %v973_v37 = vld [vmem:[%s1437_s0 + $0x14] sm:$0xf0] }
   0xc   :  { %566 = vmatpush.bf16.msra.mxu2 %v1023_v10  ;;  %v1027_v27 = vld [vmem:[%s1435_s1 + $0xc8] sm:$0xff]  ;;  %v1026_v31 = vld [vmem:[%s1435_s1 + $0xc0] sm:$0xff]  ;;  %v726_v39 = vld [vmem:[%s1437_s0 + $0x18] sm:$0xf0] }
   0xd   :  { %615 = vmatpush.bf16.msra.mxu3 %v1031_v11  ;;  %v716_v32 = vld [vmem:[%s1437_s0] sm:$0xf]  ;;  %v970_v34 = vld [vmem:[%s1437_s0 + $0x4] sm:$0xf]  ;;  %v724_v36 = vld [vmem:[%s1437_s0 + $0x8] sm:$0xf] }
   0xe   :  { %469 = vmatpush.bf16.msra.mxu0 %v1006_v12  ;;  %v971_v38 = vld [vmem:[%s1437_s0 + $0xc] sm:$0xf]  ;;  %v717_v40 = vor.u32 %v972_v33, %v716_v32  ;;  %v721_v41 = vor.u32 %v970_v34, %v718_v35  ;;  %v725_v42 = vor.u32 %v973_v37, %v724_v36  ;;  %v732_v44 = vld [vmem:[%s1437_s0 + $0x20] sm:$0xf]  ;;  %v976_v45 = vld [vmem:[%s1437_s0 + $0x2c] sm:$0xf0] }
   0xf   :  { %518 = vmatpush.bf16.msra.mxu1 %v1014_v13  ;;  %v729_v43 = vor.u32 %v971_v38, %v726_v39  ;;  %v974_v46 = vld [vmem:[%s1437_s0 + $0x24] sm:$0xf]  ;;  %v734_v47 = vld [vmem:[%s1437_s0 + $0x30] sm:$0xf0]  ;;  %v740_v48 = vld [vmem:[%s1437_s0 + $0x28] sm:$0xf]  ;;  %v733_v52 = vor.u32 %v976_v45, %v732_v44 }
  0x10   :  { %567 = vmatpush.bf16.msra.mxu2 %v1022_v14  ;;  %v977_v49 = vld [vmem:[%s1437_s0 + $0x34] sm:$0xf0]  ;;  %v975_v50 = vld [vmem:[%s1437_s0 + $0x2c] sm:$0xf]  ;;  %v742_v51 = vld [vmem:[%s1437_s0 + $0x38] sm:$0xf0]  ;;  %v737_v53 = vor.u32 %v974_v46, %v734_v47 }
  0x11   :  { %616 = vmatpush.bf16.msra.mxu3 %v1030_v15  ;;  %v741_v54 = vor.u32 %v977_v49, %v740_v48  ;;  %v745_v55 = vor.u32 %v975_v50, %v742_v51  ;;  %v748_v56 = vld [vmem:[%s1437_s0 + $0x40] sm:$0xf]  ;;  %v980_v57 = vld [vmem:[%s1437_s0 + $0x4c] sm:$0xf0]  ;;  %v978_v58 = vld [vmem:[%s1437_s0 + $0x44] sm:$0xf] }
  0x12   :  { %470 = vmatpush.bf16.msra.mxu0 %v1005_v16  ;;  %v750_v59 = vld [vmem:[%s1437_s0 + $0x50] sm:$0xf0]  ;;  %v756_v60 = vld [vmem:[%s1437_s0 + $0x48] sm:$0xf]  ;;  %v981_v61 = vld [vmem:[%s1437_s0 + $0x54] sm:$0xf0]  ;;  %v749_v0 = vor.u32 %v980_v57, %v748_v56 }
  0x13   :  { %519 = vmatpush.bf16.msra.mxu1 %v1013_v17  ;;  %v979_v62 = vld [vmem:[%s1437_s0 + $0x4c] sm:$0xf]  ;;  %v758_v63 = vld [vmem:[%s1437_s0 + $0x58] sm:$0xf0]  ;;  %v753_v1 = vor.u32 %v978_v58, %v750_v59  ;;  %v757_v2 = vor.u32 %v981_v61, %v756_v60  ;;  %v764_v4 = vld [vmem:[%s1437_s0 + $0x60] sm:$0xf] }
  0x14   :  { %568 = vmatpush.bf16.msra.mxu2 %v1021_v18  ;;  %v761_v3 = vor.u32 %v979_v62, %v758_v63  ;;  %v984_v5 = vld [vmem:[%s1437_s0 + $0x6c] sm:$0xf0]  ;;  %v982_v6 = vld [vmem:[%s1437_s0 + $0x64] sm:$0xf]  ;;  %v766_v7 = vld [vmem:[%s1437_s0 + $0x70] sm:$0xf0] }
  0x15   :  { %617 = vmatpush.bf16.msra.mxu3 %v1029_v19  ;;  %v772_v8 = vld [vmem:[%s1437_s0 + $0x68] sm:$0xf]  ;;  %v985_v9 = vld [vmem:[%s1437_s0 + $0x74] sm:$0xf0]  ;;  %v983_v10 = vld [vmem:[%s1437_s0 + $0x6c] sm:$0xf]  ;;  %v765_v12 = vor.u32 %v984_v5, %v764_v4  ;;  %v769_v13 = vor.u32 %v982_v6, %v766_v7 }
  0x16   :  { %471 = vmatpush.bf16.msra.mxu0 %v1004_v20  ;;  %v774_v11 = vld [vmem:[%s1437_s0 + $0x78] sm:$0xf0]  ;;  %v773_v14 = vor.u32 %v985_v9, %v772_v8  ;;  %v780_v16 = vld [vmem:[%s1437_s0 + $0x80] sm:$0xf]  ;;  %v988_v17 = vld [vmem:[%s1437_s0 + $0x8c] sm:$0xf0] }
  0x17   :  { %520 = vmatpush.bf16.msra.mxu1 %v1012_v21  ;;  %v777_v15 = vor.u32 %v983_v10, %v774_v11  ;;  %v986_v18 = vld [vmem:[%s1437_s0 + $0x84] sm:$0xf]  ;;  %v782_v19 = vld [vmem:[%s1437_s0 + $0x90] sm:$0xf0]  ;;  %v788_v20 = vld [vmem:[%s1437_s0 + $0x88] sm:$0xf] }
  0x18   :  { %569 = vmatpush.bf16.msra.mxu2 %v1020_v22  ;;  %v989_v21 = vld [vmem:[%s1437_s0 + $0x94] sm:$0xf0]  ;;  %v987_v22 = vld [vmem:[%s1437_s0 + $0x8c] sm:$0xf]  ;;  %v804_v32 = vld [vmem:[%s1437_s0 + $0xa8] sm:$0xf] }
  0x19   :  { %618 = vmatpush.bf16.msra.mxu3 %v1028_v23  ;;  %v790_v23 = vld [vmem:[%s1437_s0 + $0x98] sm:$0xf0]  ;;  %v993_v33 = vld [vmem:[%s1437_s0 + $0xb4] sm:$0xf0]  ;;  %v991_v34 = vld [vmem:[%s1437_s0 + $0xac] sm:$0xf] }
  0x1a   :  { %472 = vmatpush.bf16.msra.mxu0 %v1003_v24  ;;  %v781_v24 = vor.u32 %v988_v17, %v780_v16  ;;  %v806_v35 = vld [vmem:[%s1437_s0 + $0xb8] sm:$0xf0]  ;;  %v805_v38 = vor.u32 %v993_v33, %v804_v32  ;;  %v820_v44 = vld [vmem:[%s1437_s0 + $0xc8] sm:$0xf]  ;;  %v997_v45 = vld [vmem:[%s1437_s0 + $0xd4] sm:$0xf0] }
  0x1b   :  { %521 = vmatpush.bf16.msra.mxu1 %v1011_v25  ;;  %v785_v25 = vor.u32 %v986_v18, %v782_v19  ;;  %v809_v39 = vor.u32 %v991_v34, %v806_v35  ;;  %v995_v46 = vld [vmem:[%s1437_s0 + $0xcc] sm:$0xf]  ;;  %v822_v47 = vld [vmem:[%s1437_s0 + $0xd8] sm:$0xf0]  ;;  %v821_v50 = vor.u32 %v997_v45, %v820_v44  ;;  %v836_v56 = vld [vmem:[%s1437_s0 + $0xe8] sm:$0xf] }
  0x1c   :  { %570 = vmatpush.bf16.msra.mxu2 %v1019_v26  ;;  %v789_v26 = vor.u32 %v989_v21, %v788_v20  ;;  %v825_v51 = vor.u32 %v995_v46, %v822_v47  ;;  %v1001_v57 = vld [vmem:[%s1437_s0 + $0xf4] sm:$0xf0]  ;;  %v999_v58 = vld [vmem:[%s1437_s0 + $0xec] sm:$0xf]  ;;  %v838_v59 = vld [vmem:[%s1437_s0 + $0xf8] sm:$0xf0] }
  0x1d   :  { %619 = vmatpush.bf16.msra.mxu3 %v1027_v27  ;;  %v793_v27 = vor.u32 %v987_v22, %v790_v23  ;;  %v837_v62 = vor.u32 %v1001_v57, %v836_v56  ;;  %v841_v63 = vor.u32 %v999_v58, %v838_v59 }
  0x1e   :  { %473 = vmatpush.bf16.msra.mxu0 %v1002_v28  ;;  %v796_v28 = vld [vmem:[%s1437_s0 + $0xa0] sm:$0xf] }
  0x1f   :  { %522 = vmatpush.bf16.msra.mxu1 %v1010_v29  ;;  %v992_v29 = vld [vmem:[%s1437_s0 + $0xac] sm:$0xf0] }
  0x20   :  { %571 = vmatpush.bf16.msra.mxu2 %v1018_v30  ;;  %v990_v30 = vld [vmem:[%s1437_s0 + $0xa4] sm:$0xf]  ;;  %v797_v36 = vor.u32 %v992_v29, %v796_v28 }
  0x21   :  { %620 = vmatpush.bf16.msra.mxu3 %v1026_v31  ;;  %474 = vmatmul.bf16.vlgmr.msra.gmra.mxu0 %v717_v40  ;;  %v798_v31 = vld [vmem:[%s1437_s0 + $0xb0] sm:$0xf0]  ;;  %v812_v40 = vld [vmem:[%s1437_s0 + $0xc0] sm:$0xf] }
  0x22   :  { %523 = vmatmul.bf16.vlgmr.msra.gmra.mxu1 %v721_v41  ;;  %v801_v37 = vor.u32 %v990_v30, %v798_v31  ;;  %v996_v41 = vld [vmem:[%s1437_s0 + $0xcc] sm:$0xf0] }
  0x23   :  { %572 = vmatmul.bf16.vlgmr.msra.gmra.mxu2 %v725_v42  ;;  %v994_v42 = vld [vmem:[%s1437_s0 + $0xc4] sm:$0xf]  ;;  %v813_v48 = vor.u32 %v996_v41, %v812_v40 }
  0x24   :  { %621 = vmatmul.bf16.vlgmr.msra.gmra.mxu3 %v729_v43  ;;  %v814_v43 = vld [vmem:[%s1437_s0 + $0xd0] sm:$0xf0] }
  0x25   :  { %v817_v49 = vor.u32 %v994_v42, %v814_v43 }
  0x31   :  { %479 = vmatmul.bf16.gmra.mxu0 %v733_v52  ;;  %v828_v52 = vld [vmem:[%s1437_s0 + $0xe0] sm:$0xf] }
  0x32   :  { %528 = vmatmul.bf16.gmra.mxu1 %v737_v53  ;;  %v1000_v53 = vld [vmem:[%s1437_s0 + $0xec] sm:$0xf0] }
  0x33   :  { %577 = vmatmul.bf16.gmra.mxu2 %v741_v54  ;;  %v998_v54 = vld [vmem:[%s1437_s0 + $0xe4] sm:$0xf]  ;;  %v829_v60 = vor.u32 %v1000_v53, %v828_v52 }
  0x34   :  { %626 = vmatmul.bf16.gmra.mxu3 %v745_v55  ;;  %v830_v55 = vld [vmem:[%s1437_s0 + $0xf0] sm:$0xf0] }
  0x35   :  { %v833_v61 = vor.u32 %v998_v54, %v830_v55 }
  0x41   :  { %484 = vmatmul.bf16.gmra.mxu0 %v749_v0  ;;  %v1393_v0 = vld [vmem:[%s1436_s2] ss:$0 sm:$0xff] }
  0x42   :  { %533 = vmatmul.bf16.gmra.mxu1 %v753_v1 }
  0x43   :  { %582 = vmatmul.bf16.gmra.mxu2 %v757_v2 }
  0x44   :  { %631 = vmatmul.bf16.gmra.mxu3 %v761_v3 }
  0x51   :  { %489 = vmatmul.bf16.gmra.mxu0 %v765_v12 }
  0x52   :  { %538 = vmatmul.bf16.gmra.mxu1 %v769_v13 }
  0x53   :  { %587 = vmatmul.bf16.gmra.mxu2 %v773_v14 }
  0x54   :  { %636 = vmatmul.bf16.gmra.mxu3 %v777_v15 }
  0x61   :  { %494 = vmatmul.bf16.gmra.mxu0 %v781_v24 }
  0x62   :  { %543 = vmatmul.bf16.gmra.mxu1 %v785_v25 }
  0x63   :  { %592 = vmatmul.bf16.gmra.mxu2 %v789_v26 }
  0x64   :  { %641 = vmatmul.bf16.gmra.mxu3 %v793_v27 }
  0x71   :  { %499 = vmatmul.bf16.gmra.mxu0 %v797_v36 }
  0x72   :  { %548 = vmatmul.bf16.gmra.mxu1 %v801_v37 }
  0x73   :  { %597 = vmatmul.bf16.gmra.mxu2 %v805_v38 }
  0x74   :  { %646 = vmatmul.bf16.gmra.mxu3 %v809_v39 }
  0x81   :  { %504 = vmatmul.bf16.gmra.mxu0 %v813_v48 }
  0x82   :  { %553 = vmatmul.bf16.gmra.mxu1 %v817_v49 }
  0x83   :  { %602 = vmatmul.bf16.gmra.mxu2 %v821_v50 }
  0x84   :  { %651 = vmatmul.bf16.gmra.mxu3 %v825_v51 }
  0x91   :  { %509 = vmatmul.bf16.gmra.mxu0 %v829_v60 }
  0x92   :  { %558 = vmatmul.bf16.gmra.mxu1 %v833_v61 }
  0x93   :  { %607 = vmatmul.bf16.gmra.mxu2 %v837_v62 }
  0x94   :  { %656 = vmatmul.bf16.gmra.mxu3 %v841_v63 }
  0x9e   :  { %v475_v1 = vpop.f32.mrf.mxu0 }
  0x9f   :  { %v524_v2 = vpop.f32.mrf.mxu1  ;;  %v476_v3 = vadd.f32 %v1393_v0, %v475_v1 }
  0xa1   :  { %v525_v6 = vadd.f32 %v524_v2, %v476_v3 }
  0xa6   :  { %v573_v4 = vpop.f32.mrf.mxu2  ;;  %v477_v7 = vpop.f32.mrf.mxu0 }
  0xa7   :  { %v622_v5 = vpop.f32.mrf.mxu3  ;;  %v526_v8 = vpop.f32.mrf.mxu1  ;;  %v478_v9 = vadd.f32 %v1393_v0, %v477_v7  ;;  %v574_v10 = vadd.f32 %v573_v4, %v525_v6 }
  0xa9   :  { %v527_v11 = vadd.f32 %v526_v8, %v478_v9  ;;  %v623_v14 = vadd.f32 %v622_v5, %v574_v10 }
  0xab   :  { %v662_v19 = vmax.f32 %v623_v14, 0.0 }
  0xae   :  { %v575_v12 = vpop.f32.mrf.mxu2  ;;  %v480_v16 = vpop.f32.mrf.mxu0 }
  0xaf   :  { %v624_v13 = vpop.f32.mrf.mxu3  ;;  %v576_v15 = vadd.f32 %v575_v12, %v527_v11  ;;  %v529_v17 = vpop.f32.mrf.mxu1  ;;  %v481_v21 = vadd.f32 %v1393_v0, %v480_v16 }
  0xb1   :  { %v625_v18 = vadd.f32 %v624_v13, %v576_v15  ;;  %v530_v25 = vadd.f32 %v529_v17, %v481_v21 }
  0xb3   :  { %v663_v20 = vmax.f32 %v625_v18, 0.0 }
  0xb5   :  { %v1037_v22 = vpack.c.bf16 %v663_v20, %v662_v19 }
  0xb6   :  { %v578_v23 = vpop.f32.mrf.mxu2  ;;  %v482_v26 = vpop.f32.mrf.mxu0 }
  0xb7   :  { %v627_v24 = vpop.f32.mrf.mxu3  ;;  %1038 = vst [vmem:[%s1438_s3] sm:$0xff] %v1037_v22   ;;  %v531_v27 = vpop.f32.mrf.mxu1  ;;  %v483_v28 = vadd.f32 %v1393_v0, %v482_v26  ;;  %v579_v29 = vadd.f32 %v578_v23, %v530_v25 }
  0xb9   :  { %v532_v30 = vadd.f32 %v531_v27, %v483_v28  ;;  %v628_v33 = vadd.f32 %v627_v24, %v579_v29 }
  0xbb   :  { %v664_v38 = vmax.f32 %v628_v33, 0.0 }
  0xbe   :  { %v580_v31 = vpop.f32.mrf.mxu2  ;;  %v485_v35 = vpop.f32.mrf.mxu0 }
  0xbf   :  { %v629_v32 = vpop.f32.mrf.mxu3  ;;  %v581_v34 = vadd.f32 %v580_v31, %v532_v30  ;;  %v534_v36 = vpop.f32.mrf.mxu1  ;;  %v486_v40 = vadd.f32 %v1393_v0, %v485_v35 }
  0xc1   :  { %v630_v37 = vadd.f32 %v629_v32, %v581_v34  ;;  %v535_v44 = vadd.f32 %v534_v36, %v486_v40 }
  0xc3   :  { %v665_v39 = vmax.f32 %v630_v37, 0.0 }
  0xc5   :  { %v1042_v41 = vpack.c.bf16 %v665_v39, %v664_v38 }
  0xc6   :  { %v583_v42 = vpop.f32.mrf.mxu2  ;;  %v487_v45 = vpop.f32.mrf.mxu0 }
  0xc7   :  { %v632_v43 = vpop.f32.mrf.mxu3  ;;  %1074 = vst [vmem:[%s1438_s3 + $0x8] sm:$0xff] %v1042_v41   ;;  %v536_v46 = vpop.f32.mrf.mxu1  ;;  %v488_v47 = vadd.f32 %v1393_v0, %v487_v45  ;;  %v584_v48 = vadd.f32 %v583_v42, %v535_v44 }
  0xc9   :  { %v537_v49 = vadd.f32 %v536_v46, %v488_v47  ;;  %v633_v52 = vadd.f32 %v632_v43, %v584_v48 }
  0xcb   :  { %v666_v57 = vmax.f32 %v633_v52, 0.0 }
  0xce   :  { %v585_v50 = vpop.f32.mrf.mxu2  ;;  %v490_v54 = vpop.f32.mrf.mxu0 }
  0xcf   :  { %v634_v51 = vpop.f32.mrf.mxu3  ;;  %v586_v53 = vadd.f32 %v585_v50, %v537_v49  ;;  %v539_v55 = vpop.f32.mrf.mxu1  ;;  %v491_v59 = vadd.f32 %v1393_v0, %v490_v54 }
  0xd1   :  { %v635_v56 = vadd.f32 %v634_v51, %v586_v53  ;;  %v540_v63 = vadd.f32 %v539_v55, %v491_v59 }
  0xd3   :  { %v667_v58 = vmax.f32 %v635_v56, 0.0 }
  0xd5   :  { %v1047_v60 = vpack.c.bf16 %v667_v58, %v666_v57 }
  0xd6   :  { %v588_v61 = vpop.f32.mrf.mxu2  ;;  %v492_v1 = vpop.f32.mrf.mxu0 }
  0xd7   :  { %v637_v62 = vpop.f32.mrf.mxu3  ;;  %1075 = vst [vmem:[%s1438_s3 + $0x10] sm:$0xff] %v1047_v60   ;;  %v541_v2 = vpop.f32.mrf.mxu1  ;;  %v493_v3 = vadd.f32 %v1393_v0, %v492_v1  ;;  %v589_v4 = vadd.f32 %v588_v61, %v540_v63 }
  0xd9   :  { %v542_v5 = vadd.f32 %v541_v2, %v493_v3  ;;  %v638_v8 = vadd.f32 %v637_v62, %v589_v4 }
  0xdb   :  { %v668_v13 = vmax.f32 %v638_v8, 0.0 }
  0xde   :  { %v590_v6 = vpop.f32.mrf.mxu2  ;;  %v495_v10 = vpop.f32.mrf.mxu0 }
  0xdf   :  { %v639_v7 = vpop.f32.mrf.mxu3  ;;  %v591_v9 = vadd.f32 %v590_v6, %v542_v5  ;;  %v544_v11 = vpop.f32.mrf.mxu1  ;;  %v496_v15 = vadd.f32 %v1393_v0, %v495_v10 }
  0xe1   :  { %v640_v12 = vadd.f32 %v639_v7, %v591_v9  ;;  %v545_v19 = vadd.f32 %v544_v11, %v496_v15 }
  0xe3   :  { %v669_v14 = vmax.f32 %v640_v12, 0.0 }
  0xe5   :  { %v1052_v16 = vpack.c.bf16 %v669_v14, %v668_v13 }
  0xe6   :  { %v593_v17 = vpop.f32.mrf.mxu2  ;;  %v497_v20 = vpop.f32.mrf.mxu0 }
  0xe7   :  { %v642_v18 = vpop.f32.mrf.mxu3  ;;  %1076 = vst [vmem:[%s1438_s3 + $0x18] sm:$0xff] %v1052_v16   ;;  %v546_v21 = vpop.f32.mrf.mxu1  ;;  %v498_v22 = vadd.f32 %v1393_v0, %v497_v20  ;;  %v594_v23 = vadd.f32 %v593_v17, %v545_v19 }
  0xe9   :  { %v547_v24 = vadd.f32 %v546_v21, %v498_v22  ;;  %v643_v27 = vadd.f32 %v642_v18, %v594_v23 }
  0xeb   :  { %v670_v32 = vmax.f32 %v643_v27, 0.0 }
  0xee   :  { %v595_v25 = vpop.f32.mrf.mxu2  ;;  %v500_v29 = vpop.f32.mrf.mxu0 }
  0xef   :  { %v644_v26 = vpop.f32.mrf.mxu3  ;;  %v596_v28 = vadd.f32 %v595_v25, %v547_v24  ;;  %v549_v30 = vpop.f32.mrf.mxu1  ;;  %v501_v34 = vadd.f32 %v1393_v0, %v500_v29 }
  0xf1   :  { %v645_v31 = vadd.f32 %v644_v26, %v596_v28  ;;  %v550_v38 = vadd.f32 %v549_v30, %v501_v34 }
  0xf3   :  { %v671_v33 = vmax.f32 %v645_v31, 0.0 }
  0xf5   :  { %v1057_v35 = vpack.c.bf16 %v671_v33, %v670_v32 }
  0xf6   :  { %v598_v36 = vpop.f32.mrf.mxu2  ;;  %v502_v39 = vpop.f32.mrf.mxu0 }
  0xf7   :  { %v647_v37 = vpop.f32.mrf.mxu3  ;;  %1077 = vst [vmem:[%s1438_s3 + $0x20] sm:$0xff] %v1057_v35   ;;  %v551_v40 = vpop.f32.mrf.mxu1  ;;  %v503_v41 = vadd.f32 %v1393_v0, %v502_v39  ;;  %v599_v42 = vadd.f32 %v598_v36, %v550_v38 }
  0xf9   :  { %v552_v43 = vadd.f32 %v551_v40, %v503_v41  ;;  %v648_v46 = vadd.f32 %v647_v37, %v599_v42 }
  0xfb   :  { %v672_v51 = vmax.f32 %v648_v46, 0.0 }
  0xfe   :  { %v600_v44 = vpop.f32.mrf.mxu2  ;;  %v505_v48 = vpop.f32.mrf.mxu0 }
  0xff   :  { %v649_v45 = vpop.f32.mrf.mxu3  ;;  %v601_v47 = vadd.f32 %v600_v44, %v552_v43  ;;  %v554_v49 = vpop.f32.mrf.mxu1  ;;  %v506_v53 = vadd.f32 %v1393_v0, %v505_v48 }
 0x101   :  { %v650_v50 = vadd.f32 %v649_v45, %v601_v47  ;;  %v555_v57 = vadd.f32 %v554_v49, %v506_v53 }
 0x103   :  { %v673_v52 = vmax.f32 %v650_v50, 0.0 }
 0x105   :  { %v1062_v54 = vpack.c.bf16 %v673_v52, %v672_v51 }
 0x106   :  { %v603_v55 = vpop.f32.mrf.mxu2  ;;  %v507_v58 = vpop.f32.mrf.mxu0 }
 0x107   :  { %v652_v56 = vpop.f32.mrf.mxu3  ;;  %1078 = vst [vmem:[%s1438_s3 + $0x28] sm:$0xff] %v1062_v54   ;;  %v556_v59 = vpop.f32.mrf.mxu1  ;;  %v508_v60 = vadd.f32 %v1393_v0, %v507_v58  ;;  %v604_v61 = vadd.f32 %v603_v55, %v555_v57 }
 0x109   :  { %v557_v62 = vadd.f32 %v556_v59, %v508_v60  ;;  %v653_v2 = vadd.f32 %v652_v56, %v604_v61 }
 0x10b   :  { %v674_v7 = vmax.f32 %v653_v2, 0.0 }
 0x10e   :  { %v605_v63 = vpop.f32.mrf.mxu2  ;;  %v510_v4 = vpop.f32.mrf.mxu0 }
 0x10f   :  { %v654_v1 = vpop.f32.mrf.mxu3  ;;  %v606_v3 = vadd.f32 %v605_v63, %v557_v62  ;;  %v559_v6 = vpop.f32.mrf.mxu1  ;;  %v511_v9 = vadd.f32 %v1393_v0, %v510_v4 }
 0x111   :  { %v655_v5 = vadd.f32 %v654_v1, %v606_v3  ;;  %v560_v13 = vadd.f32 %v559_v6, %v511_v9 }
 0x113   :  { %v675_v8 = vmax.f32 %v655_v5, 0.0 }
 0x115   :  { %v1067_v10 = vpack.c.bf16 %v675_v8, %v674_v7 }
 0x116   :  { %v608_v11 = vpop.f32.mrf.mxu2  ;;  %v512_v14 = vpop.f32.mrf.mxu0 }
 0x117   :  { %v657_v12 = vpop.f32.mrf.mxu3  ;;  %1079 = vst [vmem:[%s1438_s3 + $0x30] sm:$0xff] %v1067_v10   ;;  %v513_v15 = vadd.f32 %v1393_v0, %v512_v14  ;;  %v609_v16 = vadd.f32 %v608_v11, %v560_v13  ;;  %v561_v17 = vpop.f32.mrf.mxu1 }
 0x119   :  { %v562_v18 = vadd.f32 %v561_v17, %v513_v15  ;;  %v658_v20 = vadd.f32 %v657_v12, %v609_v16 }
 0x11b   :  { %v676_v24 = vmax.f32 %v658_v20, 0.0 }
 0x11e   :  { %v610_v19 = vpop.f32.mrf.mxu2 }
 0x11f   :  { %v611_v21 = vadd.f32 %v610_v19, %v562_v18  ;;  %v659_v22 = vpop.f32.mrf.mxu3 }
 0x121   :  { %v660_v23 = vadd.f32 %v659_v22, %v611_v21 }
 0x123   :  { %v677_v25 = vmax.f32 %v660_v23, 0.0 }
 0x125   :  { %v1072_v26 = vpack.c.bf16 %v677_v25, %v676_v24 }
 0x127   :  { %1080 = vst [vmem:[%s1438_s3 + $0x38] sm:$0xff] %v1072_v26  }

// kernel: forward.5
= control target key start
LH: loop header
LB: loop body
LE: loop exit
PB: predicated region body
PF: predicated region fallthrough
CT: control target
= control target key end

     0   :  { %s1523_s1 = inlined_call_operand.vmem [shape: bf16[1024,128], index: 1, kind: input, shape index: {}]   ;;  %s1524_s0 = inlined_call_operand.vmem [shape: bf16[32,1024], index: 0, kind: input, shape index: {}]   ;;  %s1525_s2 = inlined_call_operand.vmem [shape: f32[1,128], index: 2, kind: input, shape index: {}]   ;;  %s1526_s3 = inlined_call_operand.vmem [shape: bf16[32,128], index: 3, kind: output, shape index: {}]  }
   0x1   :  { %v1137_v0 = vld [vmem:[%s1523_s1 + $0x38] sm:$0xff]  ;;  %v1136_v4 = vld [vmem:[%s1523_s1 + $0x30] sm:$0xff]  ;;  %v1135_v8 = vld [vmem:[%s1523_s1 + $0x28] sm:$0xff] }
   0x2   :  { %v1145_v1 = vld [vmem:[%s1523_s1 + $0x78] sm:$0xff]  ;;  %626 = vmatpush.bf16.msra.mxu0 %v1137_v0  ;;  %v1144_v5 = vld [vmem:[%s1523_s1 + $0x70] sm:$0xff]  ;;  %v1143_v9 = vld [vmem:[%s1523_s1 + $0x68] sm:$0xff] }
   0x3   :  { %v1153_v2 = vld [vmem:[%s1523_s1 + $0xb8] sm:$0xff]  ;;  %645 = vmatpush.bf16.msra.mxu1 %v1145_v1  ;;  %v1152_v6 = vld [vmem:[%s1523_s1 + $0xb0] sm:$0xff]  ;;  %v1151_v10 = vld [vmem:[%s1523_s1 + $0xa8] sm:$0xff] }
   0x4   :  { %v1161_v3 = vld [vmem:[%s1523_s1 + $0xf8] sm:$0xff]  ;;  %664 = vmatpush.bf16.msra.mxu2 %v1153_v2  ;;  %v1160_v7 = vld [vmem:[%s1523_s1 + $0xf0] sm:$0xff]  ;;  %v1159_v11 = vld [vmem:[%s1523_s1 + $0xe8] sm:$0xff] }
   0x5   :  { %683 = vmatpush.bf16.msra.mxu3 %v1161_v3  ;;  %v1134_v12 = vld [vmem:[%s1523_s1 + $0x20] sm:$0xff]  ;;  %v1133_v16 = vld [vmem:[%s1523_s1 + $0x18] sm:$0xff]  ;;  %v1132_v20 = vld [vmem:[%s1523_s1 + $0x10] sm:$0xff] }
   0x6   :  { %627 = vmatpush.bf16.msra.mxu0 %v1136_v4  ;;  %v1142_v13 = vld [vmem:[%s1523_s1 + $0x60] sm:$0xff]  ;;  %v1141_v17 = vld [vmem:[%s1523_s1 + $0x58] sm:$0xff]  ;;  %v1140_v21 = vld [vmem:[%s1523_s1 + $0x50] sm:$0xff] }
   0x7   :  { %646 = vmatpush.bf16.msra.mxu1 %v1144_v5  ;;  %v1150_v14 = vld [vmem:[%s1523_s1 + $0xa0] sm:$0xff]  ;;  %v1149_v18 = vld [vmem:[%s1523_s1 + $0x98] sm:$0xff]  ;;  %v1148_v22 = vld [vmem:[%s1523_s1 + $0x90] sm:$0xff] }
   0x8   :  { %665 = vmatpush.bf16.msra.mxu2 %v1152_v6  ;;  %v1158_v15 = vld [vmem:[%s1523_s1 + $0xe0] sm:$0xff]  ;;  %v1157_v19 = vld [vmem:[%s1523_s1 + $0xd8] sm:$0xff]  ;;  %v1156_v23 = vld [vmem:[%s1523_s1 + $0xd0] sm:$0xff] }
   0x9   :  { %684 = vmatpush.bf16.msra.mxu3 %v1160_v7  ;;  %v1131_v24 = vld [vmem:[%s1523_s1 + $0x8] sm:$0xff]  ;;  %v1130_v28 = vld [vmem:[%s1523_s1] sm:$0xff]  ;;  %v1185_v40 = vld [vmem:[%s1523_s1 + $0x1b8] sm:$0xff] }
   0xa   :  { %628 = vmatpush.bf16.msra.mxu0 %v1135_v8  ;;  %v1139_v25 = vld [vmem:[%s1523_s1 + $0x48] sm:$0xff]  ;;  %v1138_v29 = vld [vmem:[%s1523_s1 + $0x40] sm:$0xff]  ;;  %v1169_v41 = vld [vmem:[%s1523_s1 + $0x138] sm:$0xff] }
   0xb   :  { %647 = vmatpush.bf16.msra.mxu1 %v1143_v9  ;;  %v1147_v26 = vld [vmem:[%s1523_s1 + $0x88] sm:$0xff]  ;;  %v1146_v30 = vld [vmem:[%s1523_s1 + $0x80] sm:$0xff]  ;;  %v1177_v46 = vld [vmem:[%s1523_s1 + $0x178] sm:$0xff] }
   0xc   :  { %666 = vmatpush.bf16.msra.mxu2 %v1151_v10  ;;  %v1155_v27 = vld [vmem:[%s1523_s1 + $0xc8] sm:$0xff]  ;;  %v1154_v31 = vld [vmem:[%s1523_s1 + $0xc0] sm:$0xff]  ;;  %v1193_v47 = vld [vmem:[%s1523_s1 + $0x1f8] sm:$0xff] }
   0xd   :  { %685 = vmatpush.bf16.msra.mxu3 %v1159_v11  ;;  %v796_v32 = vld [vmem:[%s1524_s0] sm:$0xf]  ;;  %v1114_v34 = vld [vmem:[%s1524_s0 + $0x4] sm:$0xf]  ;;  %v804_v36 = vld [vmem:[%s1524_s0 + $0x8] sm:$0xf] }
   0xe   :  { %629 = vmatpush.bf16.msra.mxu0 %v1134_v12  ;;  %v1118_v33 = vld [vmem:[%s1524_s0 + $0x1c] sm:$0xf0]  ;;  %v798_v35 = vld [vmem:[%s1524_s0 + $0x20] sm:$0xf0]  ;;  %v1119_v37 = vld [vmem:[%s1524_s0 + $0x24] sm:$0xf0] }
   0xf   :  { %648 = vmatpush.bf16.msra.mxu1 %v1142_v13  ;;  %v1115_v38 = vld [vmem:[%s1524_s0 + $0xc] sm:$0xf]  ;;  %v797_v42 = vor.u32 %v1118_v33, %v796_v32  ;;  %v801_v43 = vor.u32 %v1114_v34, %v798_v35  ;;  %v805_v44 = vor.u32 %v1119_v37, %v804_v36  ;;  %v1184_v48 = vld [vmem:[%s1523_s1 + $0x1b0] sm:$0xff]  ;;  %v1182_v56 = vld [vmem:[%s1523_s1 + $0x1a0] sm:$0xff] }
  0x10   :  { %667 = vmatpush.bf16.msra.mxu2 %v1150_v14  ;;  %v806_v39 = vld [vmem:[%s1524_s0 + $0x28] sm:$0xf0]  ;;  %v1168_v49 = vld [vmem:[%s1523_s1 + $0x130] sm:$0xff]  ;;  %v1166_v57 = vld [vmem:[%s1523_s1 + $0x120] sm:$0xff] }
  0x11   :  { %686 = vmatpush.bf16.msra.mxu3 %v1158_v15  ;;  %v809_v45 = vor.u32 %v1115_v38, %v806_v39  ;;  %v1176_v50 = vld [vmem:[%s1523_s1 + $0x170] sm:$0xff]  ;;  %v1183_v52 = vld [vmem:[%s1523_s1 + $0x1a8] sm:$0xff]  ;;  %v1174_v58 = vld [vmem:[%s1523_s1 + $0x160] sm:$0xff] }
  0x12   :  { %630 = vmatpush.bf16.msra.mxu0 %v1133_v16  ;;  %v1192_v51 = vld [vmem:[%s1523_s1 + $0x1f0] sm:$0xff]  ;;  %v1167_v53 = vld [vmem:[%s1523_s1 + $0x128] sm:$0xff]  ;;  %v1190_v59 = vld [vmem:[%s1523_s1 + $0x1e0] sm:$0xff] }
  0x13   :  { %649 = vmatpush.bf16.msra.mxu1 %v1141_v17  ;;  %v1175_v54 = vld [vmem:[%s1523_s1 + $0x168] sm:$0xff]  ;;  %v828_v60 = vld [vmem:[%s1524_s0 + $0x40] sm:$0xf]  ;;  %v1122_v62 = vld [vmem:[%s1524_s0 + $0x44] sm:$0xf] }
  0x14   :  { %668 = vmatpush.bf16.msra.mxu2 %v1149_v18  ;;  %v1191_v55 = vld [vmem:[%s1523_s1 + $0x1e8] sm:$0xff]  ;;  %v1126_v61 = vld [vmem:[%s1524_s0 + $0x5c] sm:$0xf0]  ;;  %v830_v63 = vld [vmem:[%s1524_s0 + $0x60] sm:$0xf0] }
  0x15   :  { %687 = vmatpush.bf16.msra.mxu3 %v1157_v19  ;;  %v836_v0 = vld [vmem:[%s1524_s0 + $0x48] sm:$0xf]  ;;  %v1123_v2 = vld [vmem:[%s1524_s0 + $0x4c] sm:$0xf]  ;;  %v1181_v4 = vld [vmem:[%s1523_s1 + $0x198] sm:$0xff]  ;;  %v829_v6 = vor.u32 %v1126_v61, %v828_v60  ;;  %v833_v7 = vor.u32 %v1122_v62, %v830_v63 }
  0x16   :  { %631 = vmatpush.bf16.msra.mxu0 %v1132_v20  ;;  %v1127_v1 = vld [vmem:[%s1524_s0 + $0x64] sm:$0xf0]  ;;  %v838_v3 = vld [vmem:[%s1524_s0 + $0x68] sm:$0xf0]  ;;  %v1165_v5 = vld [vmem:[%s1523_s1 + $0x118] sm:$0xff] }
  0x17   :  { %650 = vmatpush.bf16.msra.mxu1 %v1140_v21  ;;  %v837_v8 = vor.u32 %v1127_v1, %v836_v0  ;;  %v841_v9 = vor.u32 %v1123_v2, %v838_v3  ;;  %v1173_v10 = vld [vmem:[%s1523_s1 + $0x158] sm:$0xff]  ;;  %v1180_v12 = vld [vmem:[%s1523_s1 + $0x190] sm:$0xff]  ;;  %v1179_v16 = vld [vmem:[%s1523_s1 + $0x188] sm:$0xff] }
  0x18   :  { %669 = vmatpush.bf16.msra.mxu2 %v1148_v22  ;;  %v1189_v11 = vld [vmem:[%s1523_s1 + $0x1d8] sm:$0xff]  ;;  %v1164_v13 = vld [vmem:[%s1523_s1 + $0x110] sm:$0xff]  ;;  %v1163_v17 = vld [vmem:[%s1523_s1 + $0x108] sm:$0xff] }
  0x19   :  { %688 = vmatpush.bf16.msra.mxu3 %v1156_v23  ;;  %v1172_v14 = vld [vmem:[%s1523_s1 + $0x150] sm:$0xff]  ;;  %v1171_v18 = vld [vmem:[%s1523_s1 + $0x148] sm:$0xff]  ;;  %v1178_v20 = vld [vmem:[%s1523_s1 + $0x180] sm:$0xff] }
  0x1a   :  { %632 = vmatpush.bf16.msra.mxu0 %v1131_v24  ;;  %v1188_v15 = vld [vmem:[%s1523_s1 + $0x1d0] sm:$0xff]  ;;  %v1187_v19 = vld [vmem:[%s1523_s1 + $0x1c8] sm:$0xff]  ;;  %v1162_v21 = vld [vmem:[%s1523_s1 + $0x100] sm:$0xff] }
  0x1b   :  { %651 = vmatpush.bf16.msra.mxu1 %v1139_v25  ;;  %v1170_v22 = vld [vmem:[%s1523_s1 + $0x140] sm:$0xff]  ;;  %v812_v24 = vld [vmem:[%s1524_s0 + $0x10] sm:$0xf]  ;;  %v1124_v38 = vld [vmem:[%s1524_s0 + $0x54] sm:$0xf] }
  0x1c   :  { %670 = vmatpush.bf16.msra.mxu2 %v1147_v26  ;;  %v1186_v23 = vld [vmem:[%s1523_s1 + $0x1c0] sm:$0xff]  ;;  %v1120_v25 = vld [vmem:[%s1524_s0 + $0x2c] sm:$0xf0]  ;;  %v1116_v26 = vld [vmem:[%s1524_s0 + $0x14] sm:$0xf] }
  0x1d   :  { %689 = vmatpush.bf16.msra.mxu3 %v1155_v27  ;;  %v814_v27 = vld [vmem:[%s1524_s0 + $0x30] sm:$0xf0]  ;;  %v813_v32 = vor.u32 %v1120_v25, %v812_v24  ;;  %v844_v36 = vld [vmem:[%s1524_s0 + $0x50] sm:$0xf] }
  0x1e   :  { %633 = vmatpush.bf16.msra.mxu0 %v1130_v28  ;;  %v820_v28 = vld [vmem:[%s1524_s0 + $0x18] sm:$0xf]  ;;  %v817_v33 = vor.u32 %v1116_v26, %v814_v27  ;;  %v1128_v37 = vld [vmem:[%s1524_s0 + $0x6c] sm:$0xf0]  ;;  %v846_v39 = vld [vmem:[%s1524_s0 + $0x70] sm:$0xf0] }
  0x1f   :  { %652 = vmatpush.bf16.msra.mxu1 %v1138_v29  ;;  %v1121_v29 = vld [vmem:[%s1524_s0 + $0x34] sm:$0xf0] }
  0x20   :  { %671 = vmatpush.bf16.msra.mxu2 %v1146_v30  ;;  %v1117_v30 = vld [vmem:[%s1524_s0 + $0x1c] sm:$0xf]  ;;  %v821_v34 = vor.u32 %v1121_v29, %v820_v28 }
  0x21   :  { %690 = vmatpush.bf16.msra.mxu3 %v1154_v31  ;;  %634 = vmatmul.bf16.vlgmr.msra.gmra.mxu0 %v797_v42  ;;  %v822_v31 = vld [vmem:[%s1524_s0 + $0x38] sm:$0xf0] }
  0x22   :  { %702 = vmatpush.bf16.msrb.mxu0 %v1169_v41  ;;  %653 = vmatmul.bf16.vlgmr.msra.gmra.mxu1 %v801_v43  ;;  %v825_v35 = vor.u32 %v1117_v30, %v822_v31  ;;  %v1129_v41 = vld [vmem:[%s1524_s0 + $0x74] sm:$0xf0]  ;;  %v1125_v42 = vld [vmem:[%s1524_s0 + $0x5c] sm:$0xf] }
  0x23   :  { %672 = vmatmul.bf16.vlgmr.msra.gmra.mxu2 %v805_v44  ;;  %721 = vmatpush.bf16.msrb.mxu1 %v1177_v46  ;;  %v854_v43 = vld [vmem:[%s1524_s0 + $0x78] sm:$0xf0]  ;;  %v845_v44 = vor.u32 %v1128_v37, %v844_v36 }
  0x24   :  { %740 = vmatpush.bf16.msrb.mxu2 %v1185_v40  ;;  %691 = vmatmul.bf16.vlgmr.msra.gmra.mxu3 %v809_v45  ;;  %v852_v40 = vld [vmem:[%s1524_s0 + $0x58] sm:$0xf]  ;;  %v849_v45 = vor.u32 %v1124_v38, %v846_v39 }
  0x25   :  { %759 = vmatpush.bf16.msrb.mxu3 %v1193_v47  ;;  %v853_v46 = vor.u32 %v1129_v41, %v852_v40  ;;  %v857_v47 = vor.u32 %v1125_v42, %v854_v43 }
  0x26   :  { %703 = vmatpush.bf16.msrb.mxu0 %v1168_v49 }
  0x27   :  { %722 = vmatpush.bf16.msrb.mxu1 %v1176_v50 }
  0x28   :  { %741 = vmatpush.bf16.msrb.mxu2 %v1184_v48 }
  0x29   :  { %760 = vmatpush.bf16.msrb.mxu3 %v1192_v51 }
  0x2a   :  { %704 = vmatpush.bf16.msrb.mxu0 %v1167_v53 }
  0x2b   :  { %723 = vmatpush.bf16.msrb.mxu1 %v1175_v54 }
  0x2c   :  { %742 = vmatpush.bf16.msrb.mxu2 %v1183_v52 }
  0x2d   :  { %761 = vmatpush.bf16.msrb.mxu3 %v1191_v55 }
  0x2e   :  { %705 = vmatpush.bf16.msrb.mxu0 %v1166_v57 }
  0x2f   :  { %724 = vmatpush.bf16.msrb.mxu1 %v1174_v58  ;;  %v1205_v58 = vld [vmem:[%s1525_s2] ss:$0 sm:$0xff] }
  0x30   :  { %743 = vmatpush.bf16.msrb.mxu2 %v1182_v56 }
  0x31   :  { %762 = vmatpush.bf16.msrb.mxu3 %v1190_v59  ;;  %639 = vmatmul.bf16.gmra.mxu0 %v829_v6 }
  0x32   :  { %706 = vmatpush.bf16.msrb.mxu0 %v1165_v5  ;;  %658 = vmatmul.bf16.gmra.mxu1 %v833_v7 }
  0x33   :  { %677 = vmatmul.bf16.gmra.mxu2 %v837_v8  ;;  %725 = vmatpush.bf16.msrb.mxu1 %v1173_v10 }
  0x34   :  { %744 = vmatpush.bf16.msrb.mxu2 %v1181_v4  ;;  %696 = vmatmul.bf16.gmra.mxu3 %v841_v9 }
  0x35   :  { %763 = vmatpush.bf16.msrb.mxu3 %v1189_v11 }
  0x36   :  { %707 = vmatpush.bf16.msrb.mxu0 %v1164_v13 }
  0x37   :  { %726 = vmatpush.bf16.msrb.mxu1 %v1172_v14 }
  0x38   :  { %745 = vmatpush.bf16.msrb.mxu2 %v1180_v12 }
  0x39   :  { %764 = vmatpush.bf16.msrb.mxu3 %v1188_v15 }
  0x3a   :  { %708 = vmatpush.bf16.msrb.mxu0 %v1163_v17 }
  0x3b   :  { %727 = vmatpush.bf16.msrb.mxu1 %v1171_v18 }
  0x3c   :  { %746 = vmatpush.bf16.msrb.mxu2 %v1179_v16 }
  0x3d   :  { %765 = vmatpush.bf16.msrb.mxu3 %v1187_v19 }
  0x3e   :  { %709 = vmatpush.bf16.msrb.mxu0 %v1162_v21 }
  0x3f   :  { %728 = vmatpush.bf16.msrb.mxu1 %v1170_v22 }
  0x40   :  { %747 = vmatpush.bf16.msrb.mxu2 %v1178_v20 }
  0x41   :  { %766 = vmatpush.bf16.msrb.mxu3 %v1186_v23  ;;  %710 = vmatmul.bf16.vlgmr.msrb.gmra.mxu0 %v813_v32 }
  0x42   :  { %729 = vmatmul.bf16.vlgmr.msrb.gmra.mxu1 %v817_v33 }
  0x43   :  { %748 = vmatmul.bf16.vlgmr.msrb.gmra.mxu2 %v821_v34 }
  0x44   :  { %767 = vmatmul.bf16.vlgmr.msrb.gmra.mxu3 %v825_v35 }
  0x51   :  { %715 = vmatmul.bf16.gmra.mxu0 %v845_v44 }
  0x52   :  { %734 = vmatmul.bf16.gmra.mxu1 %v849_v45 }
  0x53   :  { %753 = vmatmul.bf16.gmra.mxu2 %v853_v46 }
  0x54   :  { %772 = vmatmul.bf16.gmra.mxu3 %v857_v47 }
  0x9e   :  { %v635_v48 = vpop.f32.mrf.mxu0 }
  0x9f   :  { %v654_v49 = vpop.f32.mrf.mxu1  ;;  %v636_v61 = vadd.f32 %v1205_v58, %v635_v48 }
  0xa1   :  { %v655_v0 = vadd.f32 %v654_v49, %v636_v61 }
  0xa6   :  { %v673_v50 = vpop.f32.mrf.mxu2  ;;  %v637_v52 = vpop.f32.mrf.mxu0 }
  0xa7   :  { %v692_v51 = vpop.f32.mrf.mxu3  ;;  %v656_v53 = vpop.f32.mrf.mxu1  ;;  %v638_v1 = vadd.f32 %v1205_v58, %v637_v52  ;;  %v674_v4 = vadd.f32 %v673_v50, %v655_v0 }
  0xa9   :  { %v657_v7 = vadd.f32 %v656_v53, %v638_v1  ;;  %v693_v8 = vadd.f32 %v692_v51, %v674_v4 }
  0xae   :  { %v675_v54 = vpop.f32.mrf.mxu2  ;;  %v640_v56 = vpop.f32.mrf.mxu0 }
  0xaf   :  { %v694_v55 = vpop.f32.mrf.mxu3  ;;  %v659_v57 = vpop.f32.mrf.mxu1  ;;  %v676_v9 = vadd.f32 %v675_v54, %v657_v7  ;;  %v641_v13 = vadd.f32 %v1205_v58, %v640_v56 }
  0xb1   :  { %v695_v12 = vadd.f32 %v694_v55, %v676_v9  ;;  %v660_v19 = vadd.f32 %v659_v57, %v641_v13 }
  0xb6   :  { %v678_v59 = vpop.f32.mrf.mxu2  ;;  %v642_v62 = vpop.f32.mrf.mxu0 }
  0xb7   :  { %v697_v60 = vpop.f32.mrf.mxu3  ;;  %v661_v63 = vpop.f32.mrf.mxu1  ;;  %v643_v21 = vadd.f32 %v1205_v58, %v642_v62  ;;  %v679_v24 = vadd.f32 %v678_v59, %v660_v19 }
  0xb9   :  { %v662_v29 = vadd.f32 %v661_v63, %v643_v21  ;;  %v698_v32 = vadd.f32 %v697_v60, %v679_v24 }
  0xbe   :  { %v680_v2 = vpop.f32.mrf.mxu2  ;;  %v711_v5 = vpop.f32.mrf.mxu0 }
  0xbf   :  { %v699_v3 = vpop.f32.mrf.mxu3  ;;  %v730_v6 = vpop.f32.mrf.mxu1  ;;  %v712_v10 = vadd.f32 %v711_v5, %v693_v8  ;;  %v681_v33 = vadd.f32 %v680_v2, %v662_v29 }
  0xc1   :  { %v731_v17 = vadd.f32 %v730_v6, %v712_v10  ;;  %v700_v39 = vadd.f32 %v699_v3, %v681_v33 }
  0xc6   :  { %v749_v11 = vpop.f32.mrf.mxu2  ;;  %v713_v15 = vpop.f32.mrf.mxu0 }
  0xc7   :  { %v768_v14 = vpop.f32.mrf.mxu3  ;;  %v732_v16 = vpop.f32.mrf.mxu1  ;;  %v714_v18 = vadd.f32 %v713_v15, %v695_v12  ;;  %v750_v20 = vadd.f32 %v749_v11, %v731_v17 }
  0xc9   :  { %v733_v22 = vadd.f32 %v732_v16, %v714_v18  ;;  %v769_v25 = vadd.f32 %v768_v14, %v750_v20 }
  0xcb   :  { %v778_v34 = vmax.f32 %v769_v25, 0.0 }
  0xce   :  { %v751_v23 = vpop.f32.mrf.mxu2  ;;  %v716_v28 = vpop.f32.mrf.mxu0 }
  0xcf   :  { %v752_v26 = vadd.f32 %v751_v23, %v733_v22  ;;  %v770_v27 = vpop.f32.mrf.mxu3  ;;  %v735_v31 = vpop.f32.mrf.mxu1  ;;  %v717_v37 = vadd.f32 %v716_v28, %v698_v32 }
  0xd1   :  { %v771_v30 = vadd.f32 %v770_v27, %v752_v26  ;;  %v736_v42 = vadd.f32 %v735_v31, %v717_v37 }
  0xd3   :  { %v779_v35 = vmax.f32 %v771_v30, 0.0 }
  0xd5   :  { %v1197_v36 = vpack.c.bf16 %v779_v35, %v778_v34 }
  0xd6   :  { %v754_v38 = vpop.f32.mrf.mxu2  ;;  %v718_v41 = vpop.f32.mrf.mxu0 }
  0xd7   :  { %1198 = vst [vmem:[%s1526_s3] sm:$0xff] %v1197_v36   ;;  %v773_v40 = vpop.f32.mrf.mxu3  ;;  %v719_v43 = vadd.f32 %v718_v41, %v700_v39  ;;  %v755_v44 = vadd.f32 %v754_v38, %v736_v42  ;;  %v737_v45 = vpop.f32.mrf.mxu1 }
  0xd9   :  { %v738_v46 = vadd.f32 %v737_v45, %v719_v43  ;;  %v774_v48 = vadd.f32 %v773_v40, %v755_v44 }
  0xdb   :  { %v780_v52 = vmax.f32 %v774_v48, 0.0 }
  0xde   :  { %v756_v47 = vpop.f32.mrf.mxu2 }
  0xdf   :  { %v757_v49 = vadd.f32 %v756_v47, %v738_v46  ;;  %v775_v50 = vpop.f32.mrf.mxu3 }
  0xe1   :  { %v776_v51 = vadd.f32 %v775_v50, %v757_v49 }
  0xe3   :  { %v781_v53 = vmax.f32 %v776_v51, 0.0 }
  0xe5   :  { %v1202_v54 = vpack.c.bf16 %v781_v53, %v780_v52 }
  0xe7   :  { %1204 = vst [vmem:[%s1526_s3 + $0x8] sm:$0xff] %v1202_v54  }

</bundles_post_ra>
